<compile_context>
chip_gen: v6e
topology: v6e:2x2x1
jax: 0.10.0
libtpu: 0.0.40
codegen_flags: <defaults>
</compile_context>

<pallas_src>
import functools

import jax
import jax.numpy as jnp
from jax import lax
from jax.experimental import pallas as pl
from jax.experimental.pallas import tpu as pltpu


LN_EPS = 1e-5   # nn.LayerNorm default
LANE = 128      # TPU lane width
SUBLANE = 8     # f32 sublane height


def _round_up(n, m):
    return ((n + m - 1) // m) * m


def _pad_to(x, rows, cols):
    pr, pc = rows - x.shape[0], cols - x.shape[1]
    if pr == 0 and pc == 0:
        return x
    return jnp.pad(x, ((0, pr), (0, pc)))


# --------------------------------------------------------------------------------------
# Kernel
# --------------------------------------------------------------------------------------
def upblock_kernel(
    img_ref, skip_ref, embd_ref,
    vec_ref,                                   # (8, d_max) f32 slab: ln_w, ln_b, 4 biases
    w_imgfc_ref, w_embdfc_ref, w_imgout_ref, w_embdout_ref, w_outfc_ref,
    out_ref,
    *, true_input_dim, d_in, d_emb, d_out, compute_dtype,
):
    f32 = jnp.float32
    silu = jax.nn.silu

    # Static slices of the bias slab are cheap, lane-aligned views.
    ln_w     = vec_ref[0:1, 0:d_in]
    ln_b     = vec_ref[1:2, 0:d_in]
    b_imgfc  = vec_ref[2:3, 0:d_emb]
    b_embdfc = vec_ref[3:4, 0:d_emb]
    b_out    = vec_ref[4:5, 0:d_out]           # b_imgout + b_embdout (pre-summed)
    b_outfc  = vec_ref[5:6, 0:d_out]

    # ---- LayerNorm over the true input_dim (padded lanes are zero -> no mask needed) ----
    img = img_ref[...].astype(f32)
    inv_n = jnp.float32(1.0 / true_input_dim)
    s1 = jnp.sum(img, axis=-1, keepdims=True)
    s2 = jnp.sum(img * img, axis=-1, keepdims=True)
    mean = s1 * inv_n
    var = s2 * inv_n - mean * mean
    inv_std = lax.rsqrt(var + LN_EPS)
    # Padded lanes of img_ln are forced to 0 by zero-padded ln_w / ln_b.
    img_ln = (img - mean) * inv_std * ln_w + ln_b

    # ---- img = act(imgFC(ln(img))) ----
    h_img = jnp.dot(img_ln.astype(compute_dtype), w_imgfc_ref[...],
                    preferred_element_type=f32)
    h_img = silu(h_img + b_imgfc)

    # ---- embd = act(embdFC(embd)) ----
    h_emb = jnp.dot(embd_ref[...].astype(compute_dtype), w_embdfc_ref[...],
                    preferred_element_type=f32)
    h_emb = silu(h_emb + b_embdfc)

    # ---- out = imgOut(img) + embdOut(embd) + img_skip  (two dots, no concat) ----
    o = jnp.dot(h_img.astype(compute_dtype), w_imgout_ref[...],
                preferred_element_type=f32)
    o = o + jnp.dot(h_emb.astype(compute_dtype), w_embdout_ref[...],
                    preferred_element_type=f32)
    o = o + b_out + skip_ref[...].astype(f32)

    # ---- out = act(outFC(out)) ----
    o = jnp.dot(o.astype(compute_dtype), w_outfc_ref[...],
                preferred_element_type=f32) + b_outfc
    out_ref[...] = silu(o).astype(out_ref.dtype)


# --------------------------------------------------------------------------------------
# One-time host-side weight packing (padding, bias fusion, dtype cast)
# --------------------------------------------------------------------------------------
def pack_params(params, *, compute_dtype=jnp.bfloat16):
    input_dim = params["w_imgfc"].shape[0]
    embedding_dim = params["w_embdfc"].shape[0]
    output_dim = params["w_outfc"].shape[0]

    d_in = _round_up(input_dim, LANE)
    d_emb = _round_up(embedding_dim, LANE)
    d_out = _round_up(output_dim, LANE)
    d_max = max(d_in, d_emb, d_out)

    def pad_vec(v):
        v = v.reshape(1, -1).astype(jnp.float32)
        return jnp.pad(v, ((0, 0), (0, d_max - v.shape[1])))

    vec = jnp.concatenate(
        [pad_vec(params["ln_w"]),
         pad_vec(params["ln_b"]),
         pad_vec(params["b_imgfc"]),
         pad_vec(params["b_embdfc"]),
         pad_vec(params["b_imgout"] + params["b_embdout"]),   # fused output bias
         pad_vec(params["b_outfc"]),
         jnp.zeros((2, d_max), jnp.float32)], axis=0)          # pad slab to 8 sublanes

    return dict(
        vec=vec,
        w_imgfc=_pad_to(params["w_imgfc"], d_in, d_emb).astype(compute_dtype),
        w_embdfc=_pad_to(params["w_embdfc"], d_emb, d_emb).astype(compute_dtype),
        w_imgout=_pad_to(params["w_imgout"], d_emb, d_out).astype(compute_dtype),
        w_embdout=_pad_to(params["w_embdout"], d_emb, d_out).astype(compute_dtype),
        w_outfc=_pad_to(params["w_outfc"], d_out, d_out).astype(compute_dtype),
        compute_dtype=jnp.dtype(compute_dtype),
        dims=dict(input_dim=input_dim, embedding_dim=embedding_dim, output_dim=output_dim,
                  d_in=d_in, d_emb=d_emb, d_out=d_out),
    )


# --------------------------------------------------------------------------------------
# Forward wrapper
# --------------------------------------------------------------------------------------
def upblock_forward(img, img_skip, embd, packed, *,
                    block_rows=512, out_dtype=jnp.float32, stream_dtype=None):
    """Batch-tiled, lane-dense UpBlock forward on pre-packed params (see pack_params)."""
    dims = packed["dims"]
    compute_dtype = packed["compute_dtype"]
    if stream_dtype is None:
        # Stream activations in bf16 when computing in bf16 (halves HBM bytes), else f32.
        stream_dtype = jnp.bfloat16 if compute_dtype == jnp.dtype(jnp.bfloat16) else jnp.float32
    stream_dtype = jnp.dtype(stream_dtype)

    B = img.shape[0]
    d_in, d_emb, d_out = dims["d_in"], dims["d_emb"], dims["d_out"]

    # ---- choose row-tile size: large (512) tiles, but keep >= 2 grid steps when possible ----
    row_align = 16 if stream_dtype.itemsize < 4 else SUBLANE
    b_ceil = _round_up(B, row_align)
    tm = min(_round_up(block_rows, row_align), b_ceil)
    if b_ceil // tm < 2 and b_ceil >= 2 * row_align:
        tm = _round_up(pl.cdiv(b_ceil, 2), row_align)     # split so both v7x TCs get work
    b_pad = _round_up(b_ceil, tm)
    grid = (b_pad // tm,)

    # ---- pad / cast activations (weights were packed once in pack_params) ----
    img_p = _pad_to(img.astype(stream_dtype), b_pad, d_in)
    skip_p = _pad_to(img_skip.astype(stream_dtype), b_pad, d_out)
    embd_p = _pad_to(embd.astype(stream_dtype), b_pad, d_emb)

    weights = (packed["vec"], packed["w_imgfc"], packed["w_embdfc"],
               packed["w_imgout"], packed["w_embdout"], packed["w_outfc"])

    # ---- VMEM limit derived from actual footprint, capped for v7x headroom ----
    weight_bytes = sum(int(w.size) * w.dtype.itemsize for w in weights)
    tile_in_bytes = tm * (d_in + d_out + d_emb) * stream_dtype.itemsize
    tile_out_bytes = tm * d_out * jnp.dtype(out_dtype).itemsize
    need = weight_bytes + 2 * (tile_in_bytes + tile_out_bytes)
    vmem_limit = int(min(max(int(need * 1.25) + (2 << 20), 16 << 20), 48 << 20))

    kernel = functools.partial(
        upblock_kernel,
        true_input_dim=dims["input_dim"],
        d_in=d_in, d_emb=d_emb, d_out=d_out,
        compute_dtype=compute_dtype,
    )

    def _call(single_buffer_weights):
        def row_spec(cols):
            return pl.BlockSpec((tm, cols), lambda i: (i, 0))

        def resident_spec(shape):
            if single_buffer_weights:
                # Constant index_map -> never re-fetched; single buffer halves weight VMEM.
                return pl.BlockSpec(shape, lambda i: (0, 0), pipeline_mode=pl.Buffered(1))
            return pl.BlockSpec(shape, lambda i: (0, 0))

        in_specs = ([row_spec(d_in), row_spec(d_out), row_spec(d_emb)]
                    + [resident_spec(w.shape) for w in weights])

        out = pl.pallas_call(
            kernel,
            out_shape=jax.ShapeDtypeStruct((b_pad, d_out), out_dtype),
            grid=grid,
            in_specs=in_specs,
            out_specs=pl.BlockSpec((tm, d_out), lambda i: (i, 0)),
            compiler_params=pltpu.CompilerParams(
                dimension_semantics=("parallel",),     # shards batch tiles across TCs on v7x
                vmem_limit_bytes=vmem_limit,
            ),
        )(img_p, skip_p, embd_p, *weights)
        return jax.block_until_ready(out)

    try:
        out_p = _call(single_buffer_weights=True)
    except Exception:
        # Fallback for builds where pipeline_mode=pl.Buffered(1) is unsupported.
        out_p = _call(single_buffer_weights=False)

    return out_p[:B, :dims["output_dim"]]


# --------------------------------------------------------------------------------------
# Parameter init + pure-JAX reference
# --------------------------------------------------------------------------------------
def init_params(key, input_dim, output_dim, embedding_dim):
    """Deterministic synthetic parameters (shapes match nn.Module's __init__).
    Linear weights are stored transposed, (in, out), for x @ W."""
    ks = jax.random.split(key, 10)

    def linear(kw, kb, fan_in, fan_out):
        bound = 1.0 / jnp.sqrt(fan_in)
        w = jax.random.uniform(kw, (fan_in, fan_out), jnp.float32, -bound, bound)
        b = jax.random.uniform(kb, (1, fan_out), jnp.float32, -bound, bound)
        return w, b

    w_imgfc, b_imgfc = linear(ks[0], ks[1], input_dim, embedding_dim)
    w_embdfc, b_embdfc = linear(ks[2], ks[3], embedding_dim, embedding_dim)
    w_imgout, b_imgout = linear(ks[4], ks[5], embedding_dim, output_dim)
    w_embdout, b_embdout = linear(ks[6], ks[7], embedding_dim, output_dim)
    w_outfc, b_outfc = linear(ks[8], ks[9], output_dim, output_dim)

    return dict(
        ln_w=jnp.ones((1, input_dim), jnp.float32),
        ln_b=jnp.zeros((1, input_dim), jnp.float32),
        w_imgfc=w_imgfc, b_imgfc=b_imgfc,
        w_embdfc=w_embdfc, b_embdfc=b_embdfc,
        w_imgout=w_imgout, b_imgout=b_imgout,
        w_embdout=w_embdout, b_embdout=b_embdout,
        w_outfc=w_outfc, b_outfc=b_outfc,
    )


def reference_forward(img, img_skip, embd, p):
    """Pure-JAX reference mirroring the PyTorch forward."""
    mean = jnp.mean(img, axis=-1, keepdims=True)
    var = jnp.mean((img - mean) ** 2, axis=-1, keepdims=True)
    x = (img - mean) / jnp.sqrt(var + LN_EPS) * p["ln_w"] + p["ln_b"]
    silu = jax.nn.silu
    h_img = silu(x @ p["w_imgfc"] + p["b_imgfc"])
    h_emb = silu(embd @ p["w_embdfc"] + p["b_embdfc"])
    out = (h_img @ p["w_imgout"] + p["b_imgout"]
           + h_emb @ p["w_embdout"] + p["b_embdout"]
           + img_skip)
    return silu(out @ p["w_outfc"] + p["b_outfc"])


if __name__ == "__main__":
    key = jax.random.PRNGKey(0)
    k_img, k_skip, k_embd, k_param = jax.random.split(key, 4)

    # Small shapes; non-128-multiple feature dims and a non-tile-multiple batch exercise
    # the lane padding and row-tile clamping paths.
    batch = 64
    input_dim = 96
    output_dim = 80
    embedding_dim = 64

    img = jax.random.normal(k_img, (batch, input_dim), jnp.float32)
    img_skip = jax.random.normal(k_skip, (batch, output_dim), jnp.float32)
    embd = jax.random.normal(k_embd, (batch, embedding_dim), jnp.float32)

    params = init_params(k_param, input_dim, output_dim, embedding_dim)
    ref = reference_forward(img, img_skip, embd, params)

    # f32 path (exact-ish; correct on all generations).
    packed_f32 = pack_params(params, compute_dtype=jnp.float32)
    out_f32 = jax.block_until_ready(upblock_forward(img, img_skip, embd, packed_f32))
    assert out_f32.shape == (batch, output_dim)
    assert jnp.allclose(out_f32, ref, atol=1e-4, rtol=1e-4), "f32 kernel mismatch vs reference"

    # Default path: bf16 weights + bf16-streamed activations, f32 accumulation / LN / SiLU.
    packed_bf16 = pack_params(params)          # compute_dtype=jnp.bfloat16 default
    out_bf16 = jax.block_until_ready(upblock_forward(img, img_skip, embd, packed_bf16))
    assert out_bf16.shape == (batch, output_dim)
    assert jnp.allclose(out_bf16, ref, atol=0.2, rtol=0.05), "bf16 kernel drifted too far"

    print("KERNEL_OK")
</pallas_src>

<mosaic_0001>
module attributes {stable_mosaic.version = 11 : i64} {
  func.func @upblock_kernel(%arg0: i32, %arg1: memref<32x128xf32, #tpu.memory_space<vmem>>, %arg2: memref<32x128xf32, #tpu.memory_space<vmem>>, %arg3: memref<32x128xf32, #tpu.memory_space<vmem>>, %arg4: memref<8x128xf32, #tpu.memory_space<vmem>>, %arg5: memref<128x128xf32, #tpu.memory_space<vmem>>, %arg6: memref<128x128xf32, #tpu.memory_space<vmem>>, %arg7: memref<128x128xf32, #tpu.memory_space<vmem>>, %arg8: memref<128x128xf32, #tpu.memory_space<vmem>>, %arg9: memref<128x128xf32, #tpu.memory_space<vmem>>, %arg10: memref<32x128xf32, #tpu.memory_space<vmem>>) attributes {dimension_semantics = [#tpu.dimension_semantics<parallel>], iteration_bounds = array<i64: 2>, scalar_prefetch = 0 : i64, scratch_operands = 0 : i64, tpu.core_type = #tpu.core_type<tc>, window_params = [{transform_indices = @transform_0, window_bounds = array<i64: 32, 128>}, {transform_indices = @transform_1, window_bounds = array<i64: 32, 128>}, {transform_indices = @transform_2, window_bounds = array<i64: 32, 128>}, {pipeline_mode = #tpu.pipeline_mode<synchronous>, transform_indices = @transform_3, window_bounds = array<i64: 8, 128>}, {pipeline_mode = #tpu.pipeline_mode<synchronous>, transform_indices = @transform_4, window_bounds = array<i64: 128, 128>}, {pipeline_mode = #tpu.pipeline_mode<synchronous>, transform_indices = @transform_5, window_bounds = array<i64: 128, 128>}, {pipeline_mode = #tpu.pipeline_mode<synchronous>, transform_indices = @transform_6, window_bounds = array<i64: 128, 128>}, {pipeline_mode = #tpu.pipeline_mode<synchronous>, transform_indices = @transform_7, window_bounds = array<i64: 128, 128>}, {pipeline_mode = #tpu.pipeline_mode<synchronous>, transform_indices = @transform_8, window_bounds = array<i64: 128, 128>}, {transform_indices = @transform_9, window_bounds = array<i64: 32, 128>}]} {
    %c0 = arith.constant 0 : index
    %c0_0 = arith.constant 0 : index
    %0 = vector.load %arg4[%c0, %c0_0] : memref<8x128xf32, #tpu.memory_space<vmem>>, vector<1x128xf32>
    %c1 = arith.constant 1 : index
    %c0_1 = arith.constant 0 : index
    %1 = vector.load %arg4[%c1, %c0_1] : memref<8x128xf32, #tpu.memory_space<vmem>>, vector<1x128xf32>
    %c2 = arith.constant 2 : index
    %c0_2 = arith.constant 0 : index
    %2 = vector.load %arg4[%c2, %c0_2] : memref<8x128xf32, #tpu.memory_space<vmem>>, vector<1x128xf32>
    %c3 = arith.constant 3 : index
    %c0_3 = arith.constant 0 : index
    %3 = vector.load %arg4[%c3, %c0_3] : memref<8x128xf32, #tpu.memory_space<vmem>>, vector<1x128xf32>
    %c4 = arith.constant 4 : index
    %c0_4 = arith.constant 0 : index
    %4 = vector.load %arg4[%c4, %c0_4] : memref<8x128xf32, #tpu.memory_space<vmem>>, vector<1x128xf32>
    %c5 = arith.constant 5 : index
    %c0_5 = arith.constant 0 : index
    %5 = vector.load %arg4[%c5, %c0_5] : memref<8x128xf32, #tpu.memory_space<vmem>>, vector<1x128xf32>
    %c0_6 = arith.constant 0 : index
    %c0_7 = arith.constant 0 : index
    %6 = vector.load %arg1[%c0_6, %c0_7] : memref<32x128xf32, #tpu.memory_space<vmem>>, vector<32x128xf32>
    %cst = arith.constant dense<0.000000e+00> : vector<32xf32>
    %7 = vector.multi_reduction <add>, %6, %cst [1] : vector<32x128xf32> to vector<32xf32>
    %8 = vector.shape_cast %7 : vector<32xf32> to vector<32x1xf32>
    %9 = arith.mulf %6, %6 : vector<32x128xf32>
    %cst_8 = arith.constant dense<0.000000e+00> : vector<32xf32>
    %10 = vector.multi_reduction <add>, %9, %cst_8 [1] : vector<32x128xf32> to vector<32xf32>
    %11 = vector.shape_cast %10 : vector<32xf32> to vector<32x1xf32>
    %cst_9 = arith.constant 0.010416667 : f32
    %12 = vector.broadcast %cst_9 : f32 to vector<32x1xf32>
    %13 = arith.mulf %8, %12 : vector<32x1xf32>
    %cst_10 = arith.constant 0.010416667 : f32
    %14 = vector.broadcast %cst_10 : f32 to vector<32x1xf32>
    %15 = arith.mulf %11, %14 : vector<32x1xf32>
    %16 = arith.mulf %13, %13 : vector<32x1xf32>
    %17 = arith.subf %15, %16 : vector<32x1xf32>
    %cst_11 = arith.constant 9.99999974E-6 : f32
    %18 = vector.broadcast %cst_11 : f32 to vector<32x1xf32>
    %19 = arith.addf %17, %18 : vector<32x1xf32>
    %20 = math.rsqrt %19 : vector<32x1xf32>
    %21 = vector.broadcast %13 : vector<32x1xf32> to vector<32x128xf32>
    %22 = arith.subf %6, %21 : vector<32x128xf32>
    %23 = vector.broadcast %20 : vector<32x1xf32> to vector<32x128xf32>
    %24 = arith.mulf %22, %23 : vector<32x128xf32>
    %25 = vector.broadcast %0 : vector<1x128xf32> to vector<32x128xf32>
    %26 = arith.mulf %24, %25 : vector<32x128xf32>
    %27 = vector.broadcast %1 : vector<1x128xf32> to vector<32x128xf32>
    %28 = arith.addf %26, %27 : vector<32x128xf32>
    %c0_12 = arith.constant 0 : index
    %c0_13 = arith.constant 0 : index
    %29 = vector.load %arg5[%c0_12, %c0_13] : memref<128x128xf32, #tpu.memory_space<vmem>>, vector<128x128xf32>
    %cst_14 = arith.constant dense<0.000000e+00> : vector<32x128xf32>
    %30 = tpu.matmul %28, %29, %cst_14 {dimension_numbers = #tpu.dot_dimension_numbers<[1], [0], [0], [1], [0, 0, 1, 1], [], []>} : vector<32x128xf32>, vector<128x128xf32>, vector<32x128xf32> -> vector<32x128xf32>
    %31 = vector.broadcast %2 : vector<1x128xf32> to vector<32x128xf32>
    %32 = arith.addf %30, %31 : vector<32x128xf32>
    %33 = arith.negf %32 : vector<32x128xf32>
    %34 = math.exp %33 : vector<32x128xf32>
    %cst_15 = arith.constant 1.000000e+00 : f32
    %35 = vector.broadcast %cst_15 : f32 to vector<32x128xf32>
    %36 = arith.addf %35, %34 : vector<32x128xf32>
    %37 = arith.divf %35, %36 : vector<32x128xf32>
    %38 = arith.mulf %32, %37 : vector<32x128xf32>
    %c0_16 = arith.constant 0 : index
    %c0_17 = arith.constant 0 : index
    %39 = vector.load %arg3[%c0_16, %c0_17] : memref<32x128xf32, #tpu.memory_space<vmem>>, vector<32x128xf32>
    %c0_18 = arith.constant 0 : index
    %c0_19 = arith.constant 0 : index
    %40 = vector.load %arg6[%c0_18, %c0_19] : memref<128x128xf32, #tpu.memory_space<vmem>>, vector<128x128xf32>
    %cst_20 = arith.constant dense<0.000000e+00> : vector<32x128xf32>
    %41 = tpu.matmul %39, %40, %cst_20 {dimension_numbers = #tpu.dot_dimension_numbers<[1], [0], [0], [1], [0, 0, 1, 1], [], []>} : vector<32x128xf32>, vector<128x128xf32>, vector<32x128xf32> -> vector<32x128xf32>
    %42 = vector.broadcast %3 : vector<1x128xf32> to vector<32x128xf32>
    %43 = arith.addf %41, %42 : vector<32x128xf32>
    %44 = arith.negf %43 : vector<32x128xf32>
    %45 = math.exp %44 : vector<32x128xf32>
    %cst_21 = arith.constant 1.000000e+00 : f32
    %46 = vector.broadcast %cst_21 : f32 to vector<32x128xf32>
    %47 = arith.addf %46, %45 : vector<32x128xf32>
    %48 = arith.divf %46, %47 : vector<32x128xf32>
    %49 = arith.mulf %43, %48 : vector<32x128xf32>
    %c0_22 = arith.constant 0 : index
    %c0_23 = arith.constant 0 : index
    %50 = vector.load %arg7[%c0_22, %c0_23] : memref<128x128xf32, #tpu.memory_space<vmem>>, vector<128x128xf32>
    %cst_24 = arith.constant dense<0.000000e+00> : vector<32x128xf32>
    %51 = tpu.matmul %38, %50, %cst_24 {dimension_numbers = #tpu.dot_dimension_numbers<[1], [0], [0], [1], [0, 0, 1, 1], [], []>} : vector<32x128xf32>, vector<128x128xf32>, vector<32x128xf32> -> vector<32x128xf32>
    %c0_25 = arith.constant 0 : index
    %c0_26 = arith.constant 0 : index
    %52 = vector.load %arg8[%c0_25, %c0_26] : memref<128x128xf32, #tpu.memory_space<vmem>>, vector<128x128xf32>
    %cst_27 = arith.constant dense<0.000000e+00> : vector<32x128xf32>
    %53 = tpu.matmul %49, %52, %cst_27 {dimension_numbers = #tpu.dot_dimension_numbers<[1], [0], [0], [1], [0, 0, 1, 1], [], []>} : vector<32x128xf32>, vector<128x128xf32>, vector<32x128xf32> -> vector<32x128xf32>
    %54 = arith.addf %51, %53 : vector<32x128xf32>
    %55 = vector.broadcast %4 : vector<1x128xf32> to vector<32x128xf32>
    %56 = arith.addf %54, %55 : vector<32x128xf32>
    %c0_28 = arith.constant 0 : index
    %c0_29 = arith.constant 0 : index
    %57 = vector.load %arg2[%c0_28, %c0_29] : memref<32x128xf32, #tpu.memory_space<vmem>>, vector<32x128xf32>
    %58 = arith.addf %56, %57 : vector<32x128xf32>
    %c0_30 = arith.constant 0 : index
    %c0_31 = arith.constant 0 : index
    %59 = vector.load %arg9[%c0_30, %c0_31] : memref<128x128xf32, #tpu.memory_space<vmem>>, vector<128x128xf32>
    %cst_32 = arith.constant dense<0.000000e+00> : vector<32x128xf32>
    %60 = tpu.matmul %58, %59, %cst_32 {dimension_numbers = #tpu.dot_dimension_numbers<[1], [0], [0], [1], [0, 0, 1, 1], [], []>} : vector<32x128xf32>, vector<128x128xf32>, vector<32x128xf32> -> vector<32x128xf32>
    %61 = vector.broadcast %5 : vector<1x128xf32> to vector<32x128xf32>
    %62 = arith.addf %60, %61 : vector<32x128xf32>
    %63 = arith.negf %62 : vector<32x128xf32>
    %64 = math.exp %63 : vector<32x128xf32>
    %cst_33 = arith.constant 1.000000e+00 : f32
    %65 = vector.broadcast %cst_33 : f32 to vector<32x128xf32>
    %66 = arith.addf %65, %64 : vector<32x128xf32>
    %67 = arith.divf %65, %66 : vector<32x128xf32>
    %68 = arith.mulf %62, %67 : vector<32x128xf32>
    %c0_34 = arith.constant 0 : index
    %c0_35 = arith.constant 0 : index
    %69 = vector.load %arg10[%c0_34, %c0_35] : memref<32x128xf32, #tpu.memory_space<vmem>>, vector<32x128xf32>
    tpu.vector_store %arg10[%c0_34, %c0_35], %68 {strides = array<i32>} : memref<32x128xf32, #tpu.memory_space<vmem>>, vector<32x128xf32>,
    return
  }
  func.func @transform_0(%arg0: i32) -> (i32, i32) {
    %c0_i32 = arith.constant 0 : i32
    %c0_i32_0 = arith.constant 0 : i32
    return %arg0, %c0_i32 : i32, i32
  }
  func.func @transform_1(%arg0: i32) -> (i32, i32) {
    %c0_i32 = arith.constant 0 : i32
    %c0_i32_0 = arith.constant 0 : i32
    return %arg0, %c0_i32 : i32, i32
  }
  func.func @transform_2(%arg0: i32) -> (i32, i32) {
    %c0_i32 = arith.constant 0 : i32
    %c0_i32_0 = arith.constant 0 : i32
    return %arg0, %c0_i32 : i32, i32
  }
  func.func @transform_3(%arg0: i32) -> (i32, i32) {
    %c0_i32 = arith.constant 0 : i32
    %c0_i32_0 = arith.constant 0 : i32
    %c0_i32_1 = arith.constant 0 : i32
    return %c0_i32, %c0_i32_0 : i32, i32
  }
  func.func @transform_4(%arg0: i32) -> (i32, i32) {
    %c0_i32 = arith.constant 0 : i32
    %c0_i32_0 = arith.constant 0 : i32
    %c0_i32_1 = arith.constant 0 : i32
    return %c0_i32, %c0_i32_0 : i32, i32
  }
  func.func @transform_5(%arg0: i32) -> (i32, i32) {
    %c0_i32 = arith.constant 0 : i32
    %c0_i32_0 = arith.constant 0 : i32
    %c0_i32_1 = arith.constant 0 : i32
    return %c0_i32, %c0_i32_0 : i32, i32
  }
  func.func @transform_6(%arg0: i32) -> (i32, i32) {
    %c0_i32 = arith.constant 0 : i32
    %c0_i32_0 = arith.constant 0 : i32
    %c0_i32_1 = arith.constant 0 : i32
    return %c0_i32, %c0_i32_0 : i32, i32
  }
  func.func @transform_7(%arg0: i32) -> (i32, i32) {
    %c0_i32 = arith.constant 0 : i32
    %c0_i32_0 = arith.constant 0 : i32
    %c0_i32_1 = arith.constant 0 : i32
    return %c0_i32, %c0_i32_0 : i32, i32
  }
  func.func @transform_8(%arg0: i32) -> (i32, i32) {
    %c0_i32 = arith.constant 0 : i32
    %c0_i32_0 = arith.constant 0 : i32
    %c0_i32_1 = arith.constant 0 : i32
    return %c0_i32, %c0_i32_0 : i32, i32
  }
  func.func @transform_9(%arg0: i32) -> (i32, i32) {
    %c0_i32 = arith.constant 0 : i32
    %c0_i32_0 = arith.constant 0 : i32
    return %arg0, %c0_i32 : i32, i32
  }
}

module attributes {stable_mosaic.version = 11 : i64} {
  func.func @upblock_kernel(%arg0: i32, %arg1: memref<32x128xf32, #tpu.memory_space<vmem>>, %arg2: memref<32x128xf32, #tpu.memory_space<vmem>>, %arg3: memref<32x128xf32, #tpu.memory_space<vmem>>, %arg4: memref<8x128xf32, #tpu.memory_space<vmem>>, %arg5: memref<128x128xf32, #tpu.memory_space<vmem>>, %arg6: memref<128x128xf32, #tpu.memory_space<vmem>>, %arg7: memref<128x128xf32, #tpu.memory_space<vmem>>, %arg8: memref<128x128xf32, #tpu.memory_space<vmem>>, %arg9: memref<128x128xf32, #tpu.memory_space<vmem>>, %arg10: memref<32x128xf32, #tpu.memory_space<vmem>>) attributes {dimension_semantics = [#tpu.dimension_semantics<parallel>], iteration_bounds = array<i64: 2>, scalar_prefetch = 0 : i64, scratch_operands = 0 : i64, tpu.core_type = #tpu.core_type<tc>, window_params = [{transform_indices = @transform_0, window_bounds = array<i64: 32, 128>}, {transform_indices = @transform_1, window_bounds = array<i64: 32, 128>}, {transform_indices = @transform_2, window_bounds = array<i64: 32, 128>}, {pipeline_mode = #tpu.pipeline_mode<synchronous>, transform_indices = @transform_3, window_bounds = array<i64: 8, 128>}, {pipeline_mode = #tpu.pipeline_mode<synchronous>, transform_indices = @transform_4, window_bounds = array<i64: 128, 128>}, {pipeline_mode = #tpu.pipeline_mode<synchronous>, transform_indices = @transform_5, window_bounds = array<i64: 128, 128>}, {pipeline_mode = #tpu.pipeline_mode<synchronous>, transform_indices = @transform_6, window_bounds = array<i64: 128, 128>}, {pipeline_mode = #tpu.pipeline_mode<synchronous>, transform_indices = @transform_7, window_bounds = array<i64: 128, 128>}, {pipeline_mode = #tpu.pipeline_mode<synchronous>, transform_indices = @transform_8, window_bounds = array<i64: 128, 128>}, {transform_indices = @transform_9, window_bounds = array<i64: 32, 128>}]} {
    %c0 = arith.constant 0 : index
    %c0_0 = arith.constant 0 : index
    %0 = vector.load %arg4[%c0, %c0_0] : memref<8x128xf32, #tpu.memory_space<vmem>>, vector<1x128xf32>
    %c1 = arith.constant 1 : index
    %c0_1 = arith.constant 0 : index
    %1 = vector.load %arg4[%c1, %c0_1] : memref<8x128xf32, #tpu.memory_space<vmem>>, vector<1x128xf32>
    %c2 = arith.constant 2 : index
    %c0_2 = arith.constant 0 : index
    %2 = vector.load %arg4[%c2, %c0_2] : memref<8x128xf32, #tpu.memory_space<vmem>>, vector<1x128xf32>
    %c3 = arith.constant 3 : index
    %c0_3 = arith.constant 0 : index
    %3 = vector.load %arg4[%c3, %c0_3] : memref<8x128xf32, #tpu.memory_space<vmem>>, vector<1x128xf32>
    %c4 = arith.constant 4 : index
    %c0_4 = arith.constant 0 : index
    %4 = vector.load %arg4[%c4, %c0_4] : memref<8x128xf32, #tpu.memory_space<vmem>>, vector<1x128xf32>
    %c5 = arith.constant 5 : index
    %c0_5 = arith.constant 0 : index
    %5 = vector.load %arg4[%c5, %c0_5] : memref<8x128xf32, #tpu.memory_space<vmem>>, vector<1x128xf32>
    %c0_6 = arith.constant 0 : index
    %c0_7 = arith.constant 0 : index
    %6 = vector.load %arg1[%c0_6, %c0_7] : memref<32x128xf32, #tpu.memory_space<vmem>>, vector<32x128xf32>
    %cst = arith.constant dense<0.000000e+00> : vector<32xf32>
    %7 = vector.multi_reduction <add>, %6, %cst [1] : vector<32x128xf32> to vector<32xf32>
    %8 = vector.shape_cast %7 : vector<32xf32> to vector<32x1xf32>
    %9 = arith.mulf %6, %6 : vector<32x128xf32>
    %cst_8 = arith.constant dense<0.000000e+00> : vector<32xf32>
    %10 = vector.multi_reduction <add>, %9, %cst_8 [1] : vector<32x128xf32> to vector<32xf32>
    %11 = vector.shape_cast %10 : vector<32xf32> to vector<32x1xf32>
    %cst_9 = arith.constant 0.010416667 : f32
    %12 = vector.broadcast %cst_9 : f32 to vector<32x1xf32>
    %13 = arith.mulf %8, %12 : vector<32x1xf32>
    %cst_10 = arith.constant 0.010416667 : f32
    %14 = vector.broadcast %cst_10 : f32 to vector<32x1xf32>
    %15 = arith.mulf %11, %14 : vector<32x1xf32>
    %16 = arith.mulf %13, %13 : vector<32x1xf32>
    %17 = arith.subf %15, %16 : vector<32x1xf32>
    %cst_11 = arith.constant 9.99999974E-6 : f32
    %18 = vector.broadcast %cst_11 : f32 to vector<32x1xf32>
    %19 = arith.addf %17, %18 : vector<32x1xf32>
    %20 = math.rsqrt %19 : vector<32x1xf32>
    %21 = vector.broadcast %13 : vector<32x1xf32> to vector<32x128xf32>
    %22 = arith.subf %6, %21 : vector<32x128xf32>
    %23 = vector.broadcast %20 : vector<32x1xf32> to vector<32x128xf32>
    %24 = arith.mulf %22, %23 : vector<32x128xf32>
    %25 = vector.broadcast %0 : vector<1x128xf32> to vector<32x128xf32>
    %26 = arith.mulf %24, %25 : vector<32x128xf32>
    %27 = vector.broadcast %1 : vector<1x128xf32> to vector<32x128xf32>
    %28 = arith.addf %26, %27 : vector<32x128xf32>
    %c0_12 = arith.constant 0 : index
    %c0_13 = arith.constant 0 : index
    %29 = vector.load %arg5[%c0_12, %c0_13] : memref<128x128xf32, #tpu.memory_space<vmem>>, vector<128x128xf32>
    %cst_14 = arith.constant dense<0.000000e+00> : vector<32x128xf32>
    %30 = tpu.matmul %28, %29, %cst_14 {dimension_numbers = #tpu.dot_dimension_numbers<[1], [0], [0], [1], [0, 0, 1, 1], [], []>} : vector<32x128xf32>, vector<128x128xf32>, vector<32x128xf32> -> vector<32x128xf32>
    %31 = vector.broadcast %2 : vector<1x128xf32> to vector<32x128xf32>
    %32 = arith.addf %30, %31 : vector<32x128xf32>
    %33 = arith.negf %32 : vector<32x128xf32>
    %34 = math.exp %33 : vector<32x128xf32>
    %cst_15 = arith.constant 1.000000e+00 : f32
    %35 = vector.broadcast %cst_15 : f32 to vector<32x128xf32>
    %36 = arith.addf %35, %34 : vector<32x128xf32>
    %37 = arith.divf %35, %36 : vector<32x128xf32>
    %38 = arith.mulf %32, %37 : vector<32x128xf32>
    %c0_16 = arith.constant 0 : index
    %c0_17 = arith.constant 0 : index
    %39 = vector.load %arg3[%c0_16, %c0_17] : memref<32x128xf32, #tpu.memory_space<vmem>>, vector<32x128xf32>
    %c0_18 = arith.constant 0 : index
    %c0_19 = arith.constant 0 : index
    %40 = vector.load %arg6[%c0_18, %c0_19] : memref<128x128xf32, #tpu.memory_space<vmem>>, vector<128x128xf32>
    %cst_20 = arith.constant dense<0.000000e+00> : vector<32x128xf32>
    %41 = tpu.matmul %39, %40, %cst_20 {dimension_numbers = #tpu.dot_dimension_numbers<[1], [0], [0], [1], [0, 0, 1, 1], [], []>} : vector<32x128xf32>, vector<128x128xf32>, vector<32x128xf32> -> vector<32x128xf32>
    %42 = vector.broadcast %3 : vector<1x128xf32> to vector<32x128xf32>
    %43 = arith.addf %41, %42 : vector<32x128xf32>
    %44 = arith.negf %43 : vector<32x128xf32>
    %45 = math.exp %44 : vector<32x128xf32>
    %cst_21 = arith.constant 1.000000e+00 : f32
    %46 = vector.broadcast %cst_21 : f32 to vector<32x128xf32>
    %47 = arith.addf %46, %45 : vector<32x128xf32>
    %48 = arith.divf %46, %47 : vector<32x128xf32>
    %49 = arith.mulf %43, %48 : vector<32x128xf32>
    %c0_22 = arith.constant 0 : index
    %c0_23 = arith.constant 0 : index
    %50 = vector.load %arg7[%c0_22, %c0_23] : memref<128x128xf32, #tpu.memory_space<vmem>>, vector<128x128xf32>
    %cst_24 = arith.constant dense<0.000000e+00> : vector<32x128xf32>
    %51 = tpu.matmul %38, %50, %cst_24 {dimension_numbers = #tpu.dot_dimension_numbers<[1], [0], [0], [1], [0, 0, 1, 1], [], []>} : vector<32x128xf32>, vector<128x128xf32>, vector<32x128xf32> -> vector<32x128xf32>
    %c0_25 = arith.constant 0 : index
    %c0_26 = arith.constant 0 : index
    %52 = vector.load %arg8[%c0_25, %c0_26] : memref<128x128xf32, #tpu.memory_space<vmem>>, vector<128x128xf32>
    %cst_27 = arith.constant dense<0.000000e+00> : vector<32x128xf32>
    %53 = tpu.matmul %49, %52, %cst_27 {dimension_numbers = #tpu.dot_dimension_numbers<[1], [0], [0], [1], [0, 0, 1, 1], [], []>} : vector<32x128xf32>, vector<128x128xf32>, vector<32x128xf32> -> vector<32x128xf32>
    %54 = arith.addf %51, %53 : vector<32x128xf32>
    %55 = vector.broadcast %4 : vector<1x128xf32> to vector<32x128xf32>
    %56 = arith.addf %54, %55 : vector<32x128xf32>
    %c0_28 = arith.constant 0 : index
    %c0_29 = arith.constant 0 : index
    %57 = vector.load %arg2[%c0_28, %c0_29] : memref<32x128xf32, #tpu.memory_space<vmem>>, vector<32x128xf32>
    %58 = arith.addf %56, %57 : vector<32x128xf32>
    %c0_30 = arith.constant 0 : index
    %c0_31 = arith.constant 0 : index
    %59 = vector.load %arg9[%c0_30, %c0_31] : memref<128x128xf32, #tpu.memory_space<vmem>>, vector<128x128xf32>
    %cst_32 = arith.constant dense<0.000000e+00> : vector<32x128xf32>
    %60 = tpu.matmul %58, %59, %cst_32 {dimension_numbers = #tpu.dot_dimension_numbers<[1], [0], [0], [1], [0, 0, 1, 1], [], []>} : vector<32x128xf32>, vector<128x128xf32>, vector<32x128xf32> -> vector<32x128xf32>
    %61 = vector.broadcast %5 : vector<1x128xf32> to vector<32x128xf32>
    %62 = arith.addf %60, %61 : vector<32x128xf32>
    %63 = arith.negf %62 : vector<32x128xf32>
    %64 = math.exp %63 : vector<32x128xf32>
    %cst_33 = arith.constant 1.000000e+00 : f32
    %65 = vector.broadcast %cst_33 : f32 to vector<32x128xf32>
    %66 = arith.addf %65, %64 : vector<32x128xf32>
    %67 = arith.divf %65, %66 : vector<32x128xf32>
    %68 = arith.mulf %62, %67 : vector<32x128xf32>
    %c0_34 = arith.constant 0 : index
    %c0_35 = arith.constant 0 : index
    %69 = vector.load %arg10[%c0_34, %c0_35] : memref<32x128xf32, #tpu.memory_space<vmem>>, vector<32x128xf32>
    tpu.vector_store %arg10[%c0_34, %c0_35], %68 {strides = array<i32>} : memref<32x128xf32, #tpu.memory_space<vmem>>, vector<32x128xf32>,
    return
  }
  func.func @transform_0(%arg0: i32) -> (i32, i32) {
    %c0_i32 = arith.constant 0 : i32
    %c0_i32_0 = arith.constant 0 : i32
    return %arg0, %c0_i32 : i32, i32
  }
  func.func @transform_1(%arg0: i32) -> (i32, i32) {
    %c0_i32 = arith.constant 0 : i32
    %c0_i32_0 = arith.constant 0 : i32
    return %arg0, %c0_i32 : i32, i32
  }
  func.func @transform_2(%arg0: i32) -> (i32, i32) {
    %c0_i32 = arith.constant 0 : i32
    %c0_i32_0 = arith.constant 0 : i32
    return %arg0, %c0_i32 : i32, i32
  }
  func.func @transform_3(%arg0: i32) -> (i32, i32) {
    %c0_i32 = arith.constant 0 : i32
    %c0_i32_0 = arith.constant 0 : i32
    %c0_i32_1 = arith.constant 0 : i32
    return %c0_i32, %c0_i32_0 : i32, i32
  }
  func.func @transform_4(%arg0: i32) -> (i32, i32) {
    %c0_i32 = arith.constant 0 : i32
    %c0_i32_0 = arith.constant 0 : i32
    %c0_i32_1 = arith.constant 0 : i32
    return %c0_i32, %c0_i32_0 : i32, i32
  }
  func.func @transform_5(%arg0: i32) -> (i32, i32) {
    %c0_i32 = arith.constant 0 : i32
    %c0_i32_0 = arith.constant 0 : i32
    %c0_i32_1 = arith.constant 0 : i32
    return %c0_i32, %c0_i32_0 : i32, i32
  }
  func.func @transform_6(%arg0: i32) -> (i32, i32) {
    %c0_i32 = arith.constant 0 : i32
    %c0_i32_0 = arith.constant 0 : i32
    %c0_i32_1 = arith.constant 0 : i32
    return %c0_i32, %c0_i32_0 : i32, i32
  }
  func.func @transform_7(%arg0: i32) -> (i32, i32) {
    %c0_i32 = arith.constant 0 : i32
    %c0_i32_0 = arith.constant 0 : i32
    %c0_i32_1 = arith.constant 0 : i32
    return %c0_i32, %c0_i32_0 : i32, i32
  }
  func.func @transform_8(%arg0: i32) -> (i32, i32) {
    %c0_i32 = arith.constant 0 : i32
    %c0_i32_0 = arith.constant 0 : i32
    %c0_i32_1 = arith.constant 0 : i32
    return %c0_i32, %c0_i32_0 : i32, i32
  }
  func.func @transform_9(%arg0: i32) -> (i32, i32) {
    %c0_i32 = arith.constant 0 : i32
    %c0_i32_0 = arith.constant 0 : i32
    return %arg0, %c0_i32 : i32, i32
  }
}

</mosaic_0001>

<bundles_post_ra>
// kernel: tpu_custom_call.1
= control target key start
LH: loop header
LB: loop body
LE: loop exit
PB: predicated region body
PF: predicated region fallthrough
CT: control target
= control target key end

     0   :  { %s2811_s0 = inlined_call_operand.hbm [shape: f32[64,128], index: 0, kind: input, shape index: {}]   ;;  %s2812_s1 = inlined_call_operand.hbm [shape: f32[64,128], index: 1, kind: input, shape index: {}]   ;;  %s2813_s2 = inlined_call_operand.hbm [shape: f32[64,128], index: 2, kind: input, shape index: {}]   ;;  %s2814_s3 = inlined_call_operand.hbm [shape: f32[8,128], index: 3, kind: input, shape index: {}]   ;;  %s2815_s4 = inlined_call_operand.hbm [shape: f32[128,128], index: 4, kind: input, shape index: {}]   ;;  %s2816_s5 = inlined_call_operand.hbm [shape: f32[128,128], index: 5, kind: input, shape index: {}]   ;;  %s2817_s6 = inlined_call_operand.hbm [shape: f32[128,128], index: 6, kind: input, shape index: {}]   ;;  %s2818_s7 = inlined_call_operand.hbm [shape: f32[128,128], index: 7, kind: input, shape index: {}]   ;;  %s2819_s8 = inlined_call_operand.hbm [shape: f32[128,128], index: 8, kind: input, shape index: {}]   ;;  %s2820_s9 = inlined_call_operand.hbm [shape: f32[64,128], index: 9, kind: output, shape index: {}]  }
   0x1   :  { %2838 = sst [smem:[#allocation28_spill]] %s2812_s1 }
   0x2   :  { %2839 = sst [smem:[#allocation29_spill]] %s2814_s3 }
   0x3   :  { %2840 = sst [smem:[#allocation30_spill]] %s2816_s5 }
   0x4   :  { %2841 = sst [smem:[#allocation31_spill]] %s2818_s7 }
   0x5   :  { %14 = vsyncpa [#allocation3], 0 }
   0x6   :  { %16 = vsyncpa [#allocation3 + $0x1], 0 }
   0x7   :  { %17 = vsyncpa [#allocation6], 0 }
   0x8   :  { %19 = vsyncpa [#allocation6 + $0x1], 0 }
   0x9   :  { %20 = vsyncpa [#allocation9], 0 }
   0xa   :  { %21 = vsyncpa [#allocation12], 0 }
   0xb   :  { %22 = vsyncpa [#allocation15], 0 }
   0xc   :  { %23 = vsyncpa [#allocation4], 0 }
   0xd   :  { %25 = vsyncpa [#allocation4 + $0x1], 0  ;;  %s2348_s30 = smov 0   ;;  %s2350_s10 = smov 0  }
   0xe   :  { %s2352_s11 = smov 0   ;;  %s2354_s12 = smov 0  }
   0xf LB: > { %2842 = sst [smem:[#allocation24_spill]] %s2282_s12  ;;  %s2284_s13 = smov [#allocation8]   ;;  %s2282_s12 = sphi %s2354_s12, %s2876_s12   ;;  %s2278_s11 = sphi %s2352_s11, %s2880_s11   ;;  %s2274_s10 = sphi %s2350_s10, %s2879_s10   ;;  %s2270_s30 = sphi %s2348_s30, %s2878_s30  }
  0x10   : > { %s279_s14 = sshll.u32 %s2284_s13, 4  ;;  %s2369_s15 = sadd.s32 4294967295, %s2282_s12   ;;  %s280_s14 = int_to_ptr.vmem [resolvable:$true] %s279_s14 }
  0x11   : > { %p1408_p0 = scmp.ge.s32.totalorder %s2282_s12, 1  ;;  %p2830_p1 = scmp.eq.s32.totalorder %s2369_s15, 0 }
  0x12   : > { %p266_p2 = scmp.lt.s32.totalorder %s2282_s12, 3  ;;  %s2285_s17 = smov [#allocation11]  }
  0x13   : > { %s302_s18 = sshll.u32 %s2285_s17, 4  ;;  %s2286_s20 = smov [#allocation14]   ;;  %s2387_s18 = int_to_ptr.vmem [resolvable:$true] %s302_s18 }
  0x14   : > { %p2374_p3 = pnand %p1408_p0, %p266_p2  ;;  %s328_s21 = sshll.u32 %s2286_s20, 4  ;;  %s2389_s21 = int_to_ptr.vmem [resolvable:$true] %s328_s21 }
  0x15   : > { %s1973_s23 = scalar_lea.vmem %s280_s14, 128  ;;  %p1981_p11 = scmp.lt.s32.totalorder %s280_s14, %s280_s14 }
  0x16   : > { %s2843_s16 = scalar_select %p2374_p3, 1, 0 }
  0x17   : > { %p1817_p5 = pneg %p2374_p3  ;;  %p1974_p8 = scmp.ne.s32.totalorder %s280_s14, %s1973_s23 }
  0x18   : > { %p1982_p12 = scmp.lt.s32.totalorder %s1973_s23, %s1973_s23 }
  0x19   : > { %p2383_p6 = pnand %p1817_p5, %p2830_p1 }
  0x1a   : > { %p1983_p13 = por %p1982_p12, %p1981_p11 }
  0x1b   : > { %s2844_s19 = scalar_select %p2383_p6, 1, 0 }
  0x1c   : > { %p2393_p7 = pneg %p2383_p6 }
  0x1e   : > { %s2845_s22 = scalar_select %p2393_p7, 1, 0 }
  0x1f   : > { %p1976_p9 = pnand %p1974_p8, %p2393_p7 }
  0x21   : > { %p1977_p10 = pneg %p1976_p9 }
  0x23   : > { %p1984_p0 = pnand %p1983_p13, %p1977_p10 }
  0x25   : > { %1987 = shalt.err (!%p1984_p0)
}
  0x26   : > { %s2846_s3 = sld [smem:[#allocation29_spill]]  ;;  %s1999_s26 = scalar_lea.vmem %s2387_s18, 2048 }
  0x27   : > { %p2000_p2 = scmp.ne.s32.totalorder %s2387_s18, %s1999_s26  ;;  %p2007_p9 = scmp.lt.s32.totalorder %s2387_s18, %s2387_s18 }
  0x28   : > { %p2008_p11 = scmp.lt.s32.totalorder %s1999_s26, %s1999_s26 }
  0x29   : > { %p2002_p5 = pnand %p2000_p2, %p2393_p7 }
  0x2a   : > { %p2009_p10 = por %p2008_p11, %p2007_p9 }
  0x2b   : > { %p2003_p8 = pneg %p2002_p5 }
  0x2c   : > { %1820 = dma.hbm_to_vmem [thread:$0]  (!%p2383_p6), %s2846_s3, 128, %s280_s14, [#allocation9]  }
  0x2d   : > { %p2010_p12 = pnand %p2009_p10, %p2003_p8 }
  0x2f   : > { %2013 = shalt.err (!%p2010_p12)
}
  0x30   : > { %s2822_s27 = smov 128   ;;  %s2824_s28 = smov 8  }
  0x31   : > { %s2847_s5 = sld [smem:[#allocation30_spill]]  ;;  %s2025_s14 = scalar_lea.vmem %s2389_s21, 2048 }
  0x32   : > { %p2026_p13 = scmp.ne.s32.totalorder %s2389_s21, %s2025_s14  ;;  %p2033_p5 = scmp.lt.s32.totalorder %s2389_s21, %s2389_s21 }
  0x33   : > { %p2034_p8 = scmp.lt.s32.totalorder %s2025_s14, %s2025_s14 }
  0x34   : > { %p2028_p0 = pnand %p2026_p13, %p2393_p7 }
  0x35   : > { %p2035_p9 = por %p2034_p8, %p2033_p5 }
  0x36   : > { %p2029_p2 = pneg %p2028_p0 }
  0x37   : > { %1826 = dma.hbm_to_vmem [thread:$0]  (!%p2383_p6), %s2847_s5, 2048, %s2387_s18, [#allocation12], %s2822_s27, %s2822_s27, %s2824_s28  }
  0x38   : > { %p2036_p11 = pnand %p2035_p9, %p2029_p2 }
  0x3a   : > { %2039 = shalt.err (!%p2036_p11)
}
  0x3b   : > { %s2848_s7 = sld [smem:[#allocation31_spill]]  ;;  %s1407_s18 = sadd.s32 4294967294, %s2282_s12  }
  0x3c   : > { %s2436_s23 = sadd.s32 1, %s2282_s12   ;;  %s38_s24 = sadd.s32 1, %s2278_s11 }
  0x3d   : > { %2849 = sst [smem:[#allocation25_spill]] %s2436_s23  ;;  %s35_s25 = ssub.s32 %s2282_s12, %s2436_s23 }
  0x3e   : > { %p45_p10 = scmp.ne.s32.totalorder %s2278_s11, %s2274_s10  ;;  %p36_p12 = scmp.eq.s32.totalorder %s35_s25, 0 }
  0x3f   : > { %p46_p13 = scmp.eq.s32.totalorder %s2282_s12, 0  ;;  %p51_p0 = scmp.ne.s32.totalorder %s2274_s10, %s2270_s30 }
  0x40   : > { %p253_p2 = scmp.eq.s32.totalorder %s2369_s15, 1  ;;  %p259_p11 = scmp.eq.s32.totalorder %s1407_s18, 1 }
  0x41   : > { %1832 = dma.hbm_to_vmem [thread:$0]  (!%p2383_p6), %s2848_s7, 2048, %s2389_s21, [#allocation15], %s2822_s27, %s2822_s27, %s2824_s28  }
  0x42   : > { %s2448_s26 = scalar_select %p36_p12, %s2278_s11, %s38_s24  }
  0x43   : > { %p47_p5 = por %p46_p13, %p45_p10  ;;  %p2452_p8 = por %p2830_p1, %p51_p0 }
  0x44   : > { %2850 = sst [smem:[#allocation26_spill]] %s2448_s26  ;;  %p2456_p9 = por %p253_p2, %p45_p10 }
  0x45   : > { %s2851_s21 = scalar_select %p2452_p8, 1, 0 }
  0x46   : > { %s2852_s29 = scalar_select %p2456_p9, 1, 0 }
  0x47   : > { %p1856_p4 = scmp.lt.s32.totalorder %s2282_s12, 2  ;;  %s2826_s13 = sand.u32 1, %s2278_s11  }
  0x48   : > { %p2462_p3 = por %p259_p11, %p51_p0  ;;  %s2468_s17 = sshll.u32 %s2826_s13, 5 }
  0x49   : > { %s2471_s20 = sshll.u32 %s2282_s12, 9  ;;  %p2473_p12 = pnand %p1856_p4, %p47_p5 }
  0x4a   : > { %s2853_s14 = scalar_select %p2462_p3, 1, 0 }
  0x4b   : > { %s376_s25 = sand.u32 1, %s2282_s12   ;;  %s2856_s1 = sld [smem:[#allocation28_spill]] }
  0x4c   : > { %2854 = sst [smem:[#allocation27_spill]] %s2853_s14  ;;  %s380_s13 = scalar_lea.vmem [#allocation5], %s2468_s17 }
  0x4d   : > { %s387_s3 = sshll.u32 %s380_s13, 4  ;;  %s2487_s5 = scalar_lea.sflag [#allocation6], %s376_s25  ;;  %s2485_s3 = int_to_ptr.vmem [resolvable:$true] %s387_s3 }
  0x4e   : > { %p2493_p10 = pneg %p2473_p12 }
  0x51   : > { %s2482_s28 = scalar_lea.hbm %s2856_s1, %s2471_s20  ;;  %s2045_s23 = scalar_lea.hbm %s2856_s1, 1024 }
  0x52   : > { %s2040_s7 = scalar_lea.hbm %s2482_s28, 512  ;;  %p2046_p2 = scmp.lt.s32.totalorder %s2482_s28, %s2856_s1 }
  0x53   : > { %p2041_p4 = scmp.ne.s32.totalorder %s2482_s28, %s2040_s7  ;;  %p2047_p5 = scmp.lt.s32.totalorder %s2045_s23, %s2040_s7 }
  0x55   : > { %p2043_p13 = pnand %p2493_p10, %p2041_p4  ;;  %p2048_p11 = por %p2047_p5, %p2046_p2 }
  0x57   : > { %p2044_p0 = pneg %p2043_p13 }
  0x59   : > { %p2049_p1 = pnand %p2048_p11, %p2044_p0 }
  0x5b   : > { %2052 = shalt.err (!%p2049_p1)
}
  0x5c   : > { %s2053_s25 = scalar_lea.vmem %s2485_s3, 512  ;;  %s2289_s14 = smov [#allocation5]  }
  0x5d   : > { %p2054_p3 = scmp.ne.s32.totalorder %s2485_s3, %s2053_s25  ;;  %s2058_s27 = sshll.u32 %s2289_s14, 4  ;;  %s2059_s27 = int_to_ptr.vmem [resolvable:$false] %s2058_s27 }
  0x5e   : > { %s2060_s18 = scalar_lea.vmem %s2059_s27, 1024  ;;  %p2061_p9 = scmp.lt.s32.totalorder %s2485_s3, %s2059_s27 }
  0x5f   : > { %p2056_p4 = pnand %p2054_p3, %p2493_p10  ;;  %p2062_p8 = scmp.lt.s32.totalorder %s2060_s18, %s2053_s25 }
  0x61   : > { %p2057_p13 = pneg %p2056_p4  ;;  %p2063_p6 = por %p2062_p8, %p2061_p9 }
  0x63   : > { %p2064_p7 = pnand %p2063_p6, %p2057_p13 }
  0x65   : > { %2067 = shalt.err (!%p2064_p7)
}
  0x66   : > { %s2858_s7 = smov 8   ;;  %s2859_s12 = smov 128  }
  0x67   : > { %1842 = dma.hbm_to_vmem [thread:$0]  (!%p2473_p12), %s2482_s28, 512, %s2485_s3, %s2487_s5, %s2859_s12, %s2859_s12, %s2858_s7  }
  0x68   : > { %s2290_s23 = smov [#allocation10]   ;;  %s2291_s14 = smov [#allocation13]  }
  0x69   : > { %s289_s13 = sshll.u32 %s2290_s23, 4  ;;  %s315_s1 = sshll.u32 %s2291_s14, 4  ;;  %s290_s13 = int_to_ptr.vmem [resolvable:$true] %s289_s13  ;;  %s316_s1 = int_to_ptr.vmem [resolvable:$true] %s315_s1 }
  0x6a   : > { %s2079_s27 = scalar_lea.vmem %s290_s13, 2048  ;;  %p2860_p3 = scmp.ne.s32.totalorder %s2845_s22, 0 }
  0x6b   : > { %p2080_p1 = scmp.ne.s32.totalorder %s290_s13, %s2079_s27  ;;  %p2087_p8 = scmp.lt.s32.totalorder %s290_s13, %s290_s13 }
  0x6c   : > { %p2088_p9 = scmp.lt.s32.totalorder %s2079_s27, %s2079_s27 }
  0x6d   : > { %p2082_p6 = pnand %p2080_p1, %p2860_p3 }
  0x6e   : > { %p2089_p0 = por %p2088_p9, %p2087_p8 }
  0x6f   : > { %p2083_p7 = pneg %p2082_p6 }
  0x71   : > { %p2090_p2 = pnand %p2089_p0, %p2083_p7 }
  0x73   : > { %2093 = shalt.err (!%p2090_p2)
}
  0x74   : > { %p2861_p5 = scmp.ne.s32.totalorder %s2844_s19, 0  ;;  %s2105_s25 = scalar_lea.vmem %s316_s1, 2048 }
  0x75   : > { %p2106_p11 = scmp.ne.s32.totalorder %s316_s1, %s2105_s25  ;;  %p2113_p1 = scmp.lt.s32.totalorder %s316_s1, %s316_s1 }
  0x76   : > { %1823 = dma.hbm_to_vmem [thread:$0]  (!%p2861_p5), %s2815_s4, 2048, %s290_s13, [#allocation9], %s2859_s12, %s2859_s12, %s2858_s7  }
  0x77   : > { %p2108_p4 = pnand %p2106_p11, %p2860_p3  ;;  %p2114_p6 = scmp.lt.s32.totalorder %s2105_s25, %s2105_s25 }
  0x79   : > { %p2109_p13 = pneg %p2108_p4  ;;  %p2115_p7 = por %p2114_p6, %p2113_p1 }
  0x7b   : > { %p2116_p8 = pnand %p2115_p7, %p2109_p13 }
  0x7d   : > { %2119 = shalt.err (!%p2116_p8)
}
  0x7e   : > { %1829 = dma.hbm_to_vmem [thread:$0]  (!%p2861_p5), %s2817_s6, 2048, %s316_s1, [#allocation12], %s2859_s12, %s2859_s12, %s2858_s7  }
  0x7f   : > { %s2292_s13 = smov [#allocation16]  }
  0x80   : > { %s341_s14 = sshll.u32 %s2292_s13, 4  ;;  %s342_s14 = int_to_ptr.vmem [resolvable:$true] %s341_s14 }
  0x81   : > { %s2131_s27 = scalar_lea.vmem %s342_s14, 2048  ;;  %p2139_p11 = scmp.lt.s32.totalorder %s342_s14, %s342_s14 }
  0x82   : > { %p2132_p9 = scmp.ne.s32.totalorder %s342_s14, %s2131_s27  ;;  %p2140_p4 = scmp.lt.s32.totalorder %s2131_s27, %s2131_s27 }
  0x84   : > { %p2134_p0 = pnand %p2132_p9, %p2860_p3  ;;  %p2141_p13 = por %p2140_p4, %p2139_p11 }
  0x86   : > { %p2135_p2 = pneg %p2134_p0 }
  0x88   : > { %p2142_p1 = pnand %p2141_p13, %p2135_p2 }
  0x8a   : > { %2145 = shalt.err (!%p2142_p1)
}
  0x8b   : > { %1835 = dma.hbm_to_vmem [thread:$0]  (!%p2861_p5), %s2819_s8, 2048, %s342_s14, [#allocation15], %s2859_s12, %s2859_s12, %s2858_s7  }
  0x8c   : > { %s2553_s25 = scalar_lea.hbm %s2811_s0, %s2471_s20  ;;  %s359_s19 = scalar_lea.vmem [#allocation2], %s2468_s17 }
  0x8d   : > { %s366_s18 = sshll.u32 %s359_s19, 4  ;;  %s2862_s23 = sand.u32 1, %s2278_s11   ;;  %s2556_s18 = int_to_ptr.vmem [resolvable:$true] %s366_s18 }
  0x8e   : > { %s356_s13 = scalar_lea.sflag [#allocation3], %s2862_s23  ;;  %s2146_s27 = scalar_lea.hbm %s2553_s25, 512 }
  0x8f   : > { %p2147_p3 = scmp.ne.s32.totalorder %s2553_s25, %s2146_s27  ;;  %s2151_s1 = scalar_lea.hbm %s2811_s0, 1024 }
  0x90   : > { %p2152_p5 = scmp.lt.s32.totalorder %s2553_s25, %s2811_s0  ;;  %p2153_p8 = scmp.lt.s32.totalorder %s2151_s1, %s2146_s27 }
  0x91   : > { %p2149_p6 = pnand %p2147_p3, %p2493_p10 }
  0x92   : > { %p2154_p9 = por %p2153_p8, %p2152_p5 }
  0x93   : > { %p2150_p7 = pneg %p2149_p6 }
  0x95   : > { %p2155_p0 = pnand %p2154_p9, %p2150_p7 }
  0x97   : > { %2158 = shalt.err (!%p2155_p0)
}
  0x98   : > { %s2159_s19 = scalar_lea.vmem %s2556_s18, 512  ;;  %s2293_s23 = smov [#allocation2]  }
  0x99   : > { %p2160_p2 = scmp.ne.s32.totalorder %s2556_s18, %s2159_s19  ;;  %s2164_s14 = sshll.u32 %s2293_s23, 4  ;;  %s2165_s14 = int_to_ptr.vmem [resolvable:$false] %s2164_s14 }
  0x9a   : > { %s2166_s3 = scalar_lea.vmem %s2165_s14, 1024  ;;  %p2167_p13 = scmp.lt.s32.totalorder %s2556_s18, %s2165_s14 }
  0x9b   : > { %p2162_p11 = pnand %p2160_p2, %p2493_p10  ;;  %p2168_p1 = scmp.lt.s32.totalorder %s2166_s3, %s2159_s19 }
  0x9d   : > { %p2163_p4 = pneg %p2162_p11  ;;  %p2169_p3 = por %p2168_p1, %p2167_p13 }
  0x9f   : > { %p2170_p6 = pnand %p2169_p3, %p2163_p4 }
  0xa1   : > { %2173 = shalt.err (!%p2170_p6)
}
  0xa2   : > { %1839 = dma.hbm_to_vmem [thread:$0]  (!%p2473_p12), %s2553_s25, 512, %s2556_s18, %s356_s13, %s2859_s12, %s2859_s12, %s2858_s7  }
  0xa3   : > { %s2587_s22 = scalar_lea.hbm %s2813_s2, %s2471_s20  ;;  %s401_s28 = scalar_lea.vmem [#allocation7], %s2468_s17 }
  0xa4   : > { %s408_s19 = sshll.u32 %s401_s28, 4  ;;  %s2174_s23 = scalar_lea.hbm %s2587_s22, 512  ;;  %s409_s19 = int_to_ptr.vmem [resolvable:$true] %s408_s19 }
  0xa5   : > { %p2175_p7 = scmp.ne.s32.totalorder %s2587_s22, %s2174_s23  ;;  %s2179_s25 = scalar_lea.hbm %s2813_s2, 1024 }
  0xa6   : > { %p2180_p9 = scmp.lt.s32.totalorder %s2587_s22, %s2813_s2  ;;  %p2181_p0 = scmp.lt.s32.totalorder %s2179_s25, %s2174_s23 }
  0xa7   : > { %p2177_p5 = pnand %p2175_p7, %p2493_p10 }
  0xa8   : > { %p2182_p2 = por %p2181_p0, %p2180_p9 }
  0xa9   : > { %p2178_p8 = pneg %p2177_p5 }
  0xab   : > { %p2183_p11 = pnand %p2182_p2, %p2178_p8 }
  0xad   : > { %2186 = shalt.err (!%p2183_p11)
}
  0xae   : > { %s2187_s17 = scalar_lea.vmem %s409_s19, 512  ;;  %s2294_s20 = smov [#allocation7]  }
  0xaf   : > { %p2188_p4 = scmp.ne.s32.totalorder %s409_s19, %s2187_s17  ;;  %s2192_s27 = sshll.u32 %s2294_s20, 4  ;;  %s2193_s27 = int_to_ptr.vmem [resolvable:$false] %s2192_s27 }
  0xb0   : > { %s2194_s1 = scalar_lea.vmem %s2193_s27, 1024  ;;  %p2195_p3 = scmp.lt.s32.totalorder %s409_s19, %s2193_s27 }
  0xb1   : > { %p2190_p13 = pnand %p2188_p4, %p2493_p10  ;;  %p2196_p6 = scmp.lt.s32.totalorder %s2194_s1, %s2187_s17 }
  0xb3   : > { %p2191_p1 = pneg %p2190_p13  ;;  %p2197_p7 = por %p2196_p6, %p2195_p3 }
  0xb5   : > { %p2198_p5 = pnand %p2197_p7, %p2191_p1 }
  0xb7   : > { %2201 = shalt.err (!%p2198_p5)
}
  0xb8   : > { %1845 = dma.hbm_to_vmem [thread:$0]  (!%p2473_p12), %s2587_s22, 512, %s409_s19, %s2487_s5, %s2859_s12, %s2859_s12, %s2858_s7  }
  0xb9   : > { %p2863_p10 = scmp.ne.s32.totalorder %s2843_s16, 0 }
  0xba   : > { %s2613_s26 = sand.u32 (!%p2863_p10), 1, %s2274_s10   ;;  %p2864_p8 = scmp.ne.s32.totalorder (!%p2863_p10), %s2851_s21, 0 }
  0xbb   : > { %420 = sbr.rel (%p2863_p10) target bundleno = 1063 (0x427), region = 56  ;;  %s2616_s28 = sshll.u32 (!%p2863_p10), %s2613_s26, 5 }
  0xbc   : > { %s423_s23 = scalar_lea.sflag (!%p2863_p10), [#allocation3], %s2613_s26  ;;  %s426_s24 = scalar_lea.vmem (!%p2863_p10), [#allocation2], %s2616_s28 }
  0xc0   : > { %2245 = dma.done.wait (%p2864_p8), %s423_s23, 512  }
  0xc1   : > { %2247 = vsyncadd (%p2864_p8), %s423_s23, 4294966784  ;;  %s431_s5 = sand.u32 1, %s2369_s15   ;;  %s2626_s7 = scalar_lea.vmem [#allocation5], %s2616_s28 }
  0xc2   : > { %s432_s16 = scalar_lea.sflag [#allocation6], %s431_s5 }
  0xc3   : > { %2249 = dma.done.wait (%p2864_p8), %s432_s16, 1024  }
  0xc4   : > { %2251 = vsyncadd (%p2864_p8), %s432_s16, 4294966272  ;;  %s2633_s12 = scalar_lea.vmem [#allocation7], %s2616_s28  ;;  %p2865_p12 = scmp.eq.s32.totalorder %s2369_s15, 0 }
  0xc6   : > { %2253 = dma.done.wait (%p2865_p12), [#allocation9], 2176   ;;  %p2866_p9 = pmov %p2865_p12 }
  0xc8   : > { %2255 = vsyncadd (%p2866_p9), [#allocation9], 4294965120  ;;  %p2867_p0 = pmov %p2866_p9 }
  0xca   : > { %2257 = dma.done.wait (%p2867_p0), [#allocation12], 4096   ;;  %p2868_p2 = pmov %p2867_p0 }
  0xcb   : > { %p2869_p11 = pmov %p2867_p0 }
  0xcc   : > { %2259 = vsyncadd (%p2868_p2), [#allocation12], 4294963200 }
  0xcd   : > { %2261 = dma.done.wait (%p2869_p11), [#allocation15], 4096   ;;  %p2870_p4 = pmov %p2867_p0 }
  0xce   : > { %v2647_v0 = vld [vmem:[%s426_s24 + $0x18] sm:$0xff]  ;;  %v2649_v1 = vld [vmem:[%s426_s24] sm:$0xff]  ;;  %v2655_v5 = vld [vmem:[%s426_s24 + $0x8] sm:$0xff]  ;;  %s512_s21 = scalar_lea.vmem [#allocation17], %s2616_s28  ;;  %s1462_s19 = sshll.u32 %s2369_s15, 9 }
  0xcf   : > { %2263 = vsyncadd (%p2870_p4), [#allocation15], 4294963200  ;;  %533 = vadd.xlane.f32.xlu1 %v2647_v0  ;;  %527 = vadd.xlane.f32.xlu0 %v2649_v1  ;;  %v535_v2 = vmul.f32 %v2649_v1, %v2649_v1  ;;  %v747_v3 = vld [vmem:[#allocation11 + $0x78] sm:$0xff]  ;;  %v746_v4 = vld [vmem:[#allocation11 + $0x70] sm:$0xff]  ;;  %v536_v7 = vmul.f32 %v2655_v5, %v2655_v5  ;;  %v538_v12 = vmul.f32 %v2647_v0, %v2647_v0  ;;  %s1234_s22 = sshll.u32 %s512_s21, 4  ;;  %s2768_s25 = scalar_lea.hbm %s2820_s9, %s1462_s19  ;;  %s2763_s22 = int_to_ptr.vmem [resolvable:$true] %s1234_s22 }
  0xd0   : > { %1601 = vmatprep.subr.mxu1 %v747_v3  ;;  %v745_v6 = vld [vmem:[#allocation11 + $0x68] sm:$0xff]  ;;  %v728_v9 = vld [vmem:[%s2633_s12] sm:$0xff]  ;;  %v744_v10 = vld [vmem:[#allocation11 + $0x60] sm:$0xff]  ;;  %s1221_s18 = scalar_lea.sflag [#allocation4], %s2613_s26  ;;  %s2202_s13 = scalar_lea.vmem %s2763_s22, 512 }
  0xd1   : > { %1602 = vmatpush3.msra.mxu1 %v747_v3  ;;  %v2660_v8 = vld [vmem:[%s426_s24 + $0x10] sm:$0xff]  ;;  %1633 = vmatprep.mubr.f32.mxu1 %v728_v9  ;;  %v743_v13 = vld [vmem:[#allocation11 + $0x58] sm:$0xff]  ;;  %v742_v14 = vld [vmem:[#allocation11 + $0x50] sm:$0xff]  ;;  %p2203_p13 = scmp.ne.s32.totalorder %s2763_s22, %s2202_s13  ;;  %p2871_p1 = scmp.ne.s32.totalorder %s2852_s29, 0 }
  0xd2   : > { %1603 = vmatprep.subr.mxu1 %v746_v4  ;;  %v537_v11 = vmul.f32 %v2660_v8, %v2660_v8  ;;  %v610_v15 = vld [vmem:[#allocation10 + $0x78] sm:$0xff]  ;;  %v741_v16 = vld [vmem:[#allocation11 + $0x48] sm:$0xff]  ;;  %v609_v17 = vld [vmem:[#allocation10 + $0x70] sm:$0xff]  ;;  %s2295_s15 = smov [#allocation17]  }
  0xd3   : > { %529 = vadd.xlane.f32.xlu0 %v2655_v5  ;;  %539 = vadd.xlane.f32.xlu1 %v535_v2  ;;  %v740_v18 = vld [vmem:[#allocation11 + $0x40] sm:$0xff]  ;;  %v608_v19 = vld [vmem:[#allocation10 + $0x68] sm:$0xff]  ;;  %v739_v20 = vld [vmem:[#allocation11 + $0x38] sm:$0xff]  ;;  %p2204_p3 = pnand %p2203_p13, %p2871_p1  ;;  %s2206_s17 = sshll.u32 %s2295_s15, 4  ;;  %s2207_s17 = int_to_ptr.vmem [resolvable:$false] %s2206_s17 }
  0xd4   : > { %1604 = vmatpush3.msra.mxu1 %v746_v4  ;;  %1563 = vmatprep.subr.mxu0 %v610_v15  ;;  %v607_v21 = vld [vmem:[#allocation10 + $0x60] sm:$0xff]  ;;  %v738_v22 = vld [vmem:[#allocation11 + $0x30] sm:$0xff]  ;;  %v606_v23 = vld [vmem:[#allocation10 + $0x58] sm:$0xff]  ;;  %s2208_s20 = scalar_lea.vmem %s2207_s17, 1024  ;;  %p2209_p7 = scmp.lt.s32.totalorder %s2763_s22, %s2207_s17 }
  0xd5   : > { %1605 = vmatprep.subr.mxu1 %v745_v6  ;;  %1564 = vmatpush3.msra.mxu0 %v610_v15  ;;  %v737_v24 = vld [vmem:[#allocation11 + $0x28] sm:$0xff]  ;;  %v605_v25 = vld [vmem:[#allocation10 + $0x50] sm:$0xff]  ;;  %v736_v26 = vld [vmem:[#allocation11 + $0x20] sm:$0xff]  ;;  %p2205_p6 = pneg %p2204_p3  ;;  %p2210_p5 = scmp.lt.s32.totalorder %s2208_s20, %s2202_s13 }
  0xd6   : > { %1606 = vmatpush3.msra.mxu1 %v745_v6  ;;  %1565 = vmatprep.subr.mxu0 %v609_v17  ;;  %v604_v27 = vld [vmem:[#allocation10 + $0x48] sm:$0xff]  ;;  %v735_v28 = vld [vmem:[#allocation11 + $0x18] sm:$0xff]  ;;  %v603_v29 = vld [vmem:[#allocation10 + $0x40] sm:$0xff] }
  0xd7   : > { %531 = vadd.xlane.f32.xlu0 %v2660_v8  ;;  %541 = vadd.xlane.f32.xlu1 %v536_v7  ;;  %v734_v30 = vld [vmem:[#allocation11 + $0x10] sm:$0xff]  ;;  %v602_v31 = vld [vmem:[#allocation10 + $0x38] sm:$0xff]  ;;  %v733_v32 = vld [vmem:[#allocation11 + $0x8] sm:$0xff]  ;;  %p2211_p10 = por %p2210_p5, %p2209_p7 }
  0xd8   : > { %1607 = vmatprep.subr.mxu1 %v744_v10  ;;  %1566 = vmatpush3.msra.mxu0 %v609_v17  ;;  %v601_v33 = vld [vmem:[#allocation10 + $0x30] sm:$0xff]  ;;  %v600_v34 = vld [vmem:[#allocation10 + $0x28] sm:$0xff]  ;;  %v732_v35 = vld [vmem:[#allocation11] sm:$0xff] }
  0xd9   : > { %1608 = vmatpush3.msra.mxu1 %v744_v10  ;;  %1567 = vmatprep.subr.mxu0 %v608_v19  ;;  %v599_v36 = vld [vmem:[#allocation10 + $0x20] sm:$0xff]  ;;  %v730_v38 = vld [vmem:[%s2633_s12 + $0x10] sm:$0xff]  ;;  %v598_v39 = vld [vmem:[#allocation10 + $0x18] sm:$0xff]  ;;  %p2212_p8 = pnand %p2211_p10, %p2205_p6 }
  0xda   : > { %1609 = vmatprep.subr.mxu1 %v743_v13  ;;  %1568 = vmatpush3.msra.mxu0 %v608_v19  ;;  %v729_v37 = vld [vmem:[%s2633_s12 + $0x8] sm:$0xff]  ;;  %v597_v40 = vld [vmem:[#allocation10 + $0x10] sm:$0xff]  ;;  %v596_v42 = vld [vmem:[#allocation10 + $0x8] sm:$0xff] }
  0xdb   : > { %543 = vadd.xlane.f32.xlu0 %v537_v11  ;;  %545 = vadd.xlane.f32.xlu1 %v538_v12  ;;  %v731_v41 = vld [vmem:[%s2633_s12 + $0x18] sm:$0xff]  ;;  %v595_v43 = vld [vmem:[#allocation10] sm:$0xff]  ;;  %v896_v49 = vld [vmem:[#allocation14 + $0x78] sm:$0xff] }
  0xdc   : > { %1610 = vmatpush3.msra.mxu1 %v743_v13  ;;  %1569 = vmatprep.subr.mxu0 %v607_v21  ;;  %v1436_v15 = vld [vmem:[#allocation8] ss:$0 sm:$0xff]  ;;  %v1437_v17 = vld [vmem:[#allocation8 + $0x1] ss:$0 sm:$0xff] }
  0xdd   : > { %1611 = vmatprep.subr.mxu1 %v742_v14  ;;  %1570 = vmatpush3.msra.mxu0 %v607_v21 }
  0xde   : > { %1612 = vmatpush3.msra.mxu1 %v742_v14  ;;  %1571 = vmatprep.subr.mxu0 %v606_v23 }
  0xdf   : > { %1613 = vmatprep.subr.mxu1 %v741_v16  ;;  %1572 = vmatpush3.msra.mxu0 %v606_v23 }
  0xe0   : > { %1614 = vmatpush3.msra.mxu1 %v741_v16  ;;  %1573 = vmatprep.subr.mxu0 %v605_v25 }
  0xe1   : > { %1615 = vmatprep.subr.mxu1 %v740_v18  ;;  %1574 = vmatpush3.msra.mxu0 %v605_v25 }
  0xe2   : > { %1616 = vmatpush3.msra.mxu1 %v740_v18  ;;  %1575 = vmatprep.subr.mxu0 %v604_v27 }
  0xe3   : > { %1617 = vmatprep.subr.mxu1 %v739_v20  ;;  %1576 = vmatpush3.msra.mxu0 %v604_v27 }
  0xe4   : > { %1618 = vmatpush3.msra.mxu1 %v739_v20  ;;  %1577 = vmatprep.subr.mxu0 %v603_v29 }
  0xe5   : > { %1619 = vmatprep.subr.mxu1 %v738_v22  ;;  %1578 = vmatpush3.msra.mxu0 %v603_v29 }
  0xe6   : > { %1620 = vmatpush3.msra.mxu1 %v738_v22  ;;  %1579 = vmatprep.subr.mxu0 %v602_v31 }
  0xe7   : > { %1621 = vmatprep.subr.mxu1 %v737_v24  ;;  %1580 = vmatpush3.msra.mxu0 %v602_v31 }
  0xe8   : > { %1622 = vmatpush3.msra.mxu1 %v737_v24  ;;  %1581 = vmatprep.subr.mxu0 %v601_v33 }
  0xe9   : > { %1623 = vmatprep.subr.mxu1 %v736_v26  ;;  %1582 = vmatpush3.msra.mxu0 %v601_v33 }
  0xea   : > { %1624 = vmatpush3.msra.mxu1 %v736_v26  ;;  %1583 = vmatprep.subr.mxu0 %v600_v34 }
  0xeb   : > { %1625 = vmatprep.subr.mxu1 %v735_v28  ;;  %1584 = vmatpush3.msra.mxu0 %v600_v34 }
  0xec   : > { %1626 = vmatpush3.msra.mxu1 %v735_v28  ;;  %1585 = vmatprep.subr.mxu0 %v599_v36 }
  0xed   : > { %1627 = vmatprep.subr.mxu1 %v734_v30  ;;  %1586 = vmatpush3.msra.mxu0 %v599_v36  ;;  %v890_v36 = vld [vmem:[#allocation14 + $0x48] sm:$0xff] }
  0xee   : > { %1628 = vmatpush3.msra.mxu1 %v734_v30  ;;  %1587 = vmatprep.subr.mxu0 %v598_v39  ;;  %v895_v30 = vld [vmem:[#allocation14 + $0x70] sm:$0xff] }
  0xef   : > { %1629 = vmatprep.subr.mxu1 %v733_v32  ;;  %1588 = vmatpush3.msra.mxu0 %v598_v39  ;;  %v887_v39 = vld [vmem:[#allocation14 + $0x30] sm:$0xff] }
  0xf0   : > { %1630 = vmatpush3.msra.mxu1 %v733_v32  ;;  %1589 = vmatprep.subr.mxu0 %v597_v40 }
  0xf1   : > { %1631 = vmatprep.subr.mxu1 %v732_v35  ;;  %1590 = vmatpush3.msra.mxu0 %v597_v40  ;;  %v886_v40 = vld [vmem:[#allocation14 + $0x28] sm:$0xff] }
  0xf2   : > { %1632 = vmatpush3.msra.mxu1 %v732_v35  ;;  %1591 = vmatprep.subr.mxu0 %v596_v42  ;;  %v891_v35 = vld [vmem:[#allocation14 + $0x50] sm:$0xff] }
  0xf3   : > { %1634 = vmatmul.mubr.f32.vlgmr.msra.gmra.mxu1 %v729_v37  ;;  %1592 = vmatpush3.msra.mxu0 %v596_v42  ;;  %v889_v37 = vld [vmem:[#allocation14 + $0x40] sm:$0xff]  ;;  %v884_v42 = vld [vmem:[#allocation14 + $0x18] sm:$0xff] }
  0xf4   : > { %1636 = vmatprep.mubr.f32.mxu1 %v730_v38  ;;  %1593 = vmatprep.subr.mxu0 %v595_v43  ;;  %v888_v38 = vld [vmem:[#allocation14 + $0x38] sm:$0xff] }
  0xf5   : > { %1594 = vmatpush3.msra.mxu0 %v595_v43  ;;  %v883_v43 = vld [vmem:[#allocation14 + $0x10] sm:$0xff] }
  0xf6   : > { %1639 = vmatprep.subr.mxu0 %v896_v49 }
  0xf7   : > { %1637 = vmatmul.mubr.f32.gmra.mxu1 %v731_v41  ;;  %v885_v41 = vld [vmem:[#allocation14 + $0x20] sm:$0xff] }
 0x158   : > { %v534_v44 = vpop.xlane.xlu1 %533  ;;  %v528_v45 = vpop.xlane.xlu0 %527 }
 0x159   : > { %v547_v46 = vmul.f32 0.010416667, %v528_v45  ;;  %v550_v54 = vmul.f32 0.010416667, %v534_v44  ;;  %v1443_v44 = vld [vmem:[#allocation8 + $0x3] ss:$0 sm:$0xff] }
 0x15b   : > { %v555_v50 = vmul.f32 %v547_v46, %v547_v46  ;;  %v558_v62 = vmul.f32 %v550_v54, %v550_v54  ;;  %v571_v13 = vsub.f32 %v2649_v1, %v547_v46  ;;  %v574_v26 = vsub.f32 %v2647_v0, %v550_v54  ;;  %v892_v0 = vld [vmem:[#allocation14 + $0x58] sm:$0xff] }
 0x15c   : > { %v530_v47 = vpop.xlane.xlu0 %529  ;;  %v540_v48 = vpop.xlane.xlu1 %539 }
 0x15d   : > { %v548_v51 = vmul.f32 0.010416667, %v530_v47  ;;  %v551_v52 = vmul.f32 0.010416667, %v540_v48 }
 0x15f   : > { %v559_v53 = vsub.f32 %v551_v52, %v555_v50  ;;  %v556_v57 = vmul.f32 %v548_v51, %v548_v51  ;;  %v572_v18 = vsub.f32 %v2655_v5, %v548_v51  ;;  %v894_v5 = vld [vmem:[#allocation14 + $0x68] sm:$0xff] }
 0x160   : > { %v532_v55 = vpop.xlane.xlu0 %531  ;;  %v542_v56 = vpop.xlane.xlu1 %541 }
 0x161   : > { %v563_v58 = vadd.f32 1e-05, %v559_v53  ;;  %v549_v59 = vmul.f32 0.010416667, %v532_v55  ;;  %v552_v60 = vmul.f32 0.010416667, %v542_v56 }
 0x162   : > { %v882_v56 = vld [vmem:[#allocation14 + $0x8] sm:$0xff] }
 0x163   : > { %1906 = vrsqrt.f32 %v563_v58  ;;  %v560_v61 = vsub.f32 %v552_v60, %v556_v57  ;;  %v557_v3 = vmul.f32 %v549_v59, %v549_v59  ;;  %v573_v23 = vsub.f32 %v2660_v8, %v549_v59  ;;  %v893_v8 = vld [vmem:[#allocation14 + $0x60] sm:$0xff]  ;;  %v880_v59 = vld [vmem:[#allocation13 + $0x78] sm:$0xff] }
 0x164   : > { %v544_v63 = vpop.xlane.xlu0 %543  ;;  %v546_v2 = vpop.xlane.xlu1 %545  ;;  %v881_v58 = vld [vmem:[#allocation14] sm:$0xff]  ;;  %1677 = vmatprep.subr.mxu1 %v880_v59 }
 0x165   : > { %v564_v4 = vadd.f32 1e-05, %v560_v61  ;;  %v553_v6 = vmul.f32 0.010416667, %v544_v63  ;;  %v554_v7 = vmul.f32 0.010416667, %v546_v2  ;;  %1678 = vmatpush3.msra.mxu1 %v880_v59 }
 0x166   : > { %v879_v61 = vld [vmem:[#allocation13 + $0x70] sm:$0xff]  ;;  %v878_v2 = vld [vmem:[#allocation13 + $0x68] sm:$0xff] }
 0x167   : > { %1908 = vrsqrt.f32 %v564_v4  ;;  %v561_v9 = vsub.f32 %v553_v6, %v557_v3  ;;  %v562_v10 = vsub.f32 %v554_v7, %v558_v62  ;;  %1679 = vmatprep.subr.mxu1 %v879_v61  ;;  %v877_v6 = vld [vmem:[#allocation13 + $0x60] sm:$0xff] }
 0x168   : > { %1680 = vmatpush3.msra.mxu1 %v879_v61 }
 0x169   : > { %v565_v11 = vadd.f32 1e-05, %v561_v9  ;;  %v566_v12 = vadd.f32 1e-05, %v562_v10  ;;  %1681 = vmatprep.subr.mxu1 %v878_v2  ;;  %v876_v10 = vld [vmem:[#allocation13 + $0x58] sm:$0xff] }
 0x16a   : > { %1682 = vmatpush3.msra.mxu1 %v878_v2 }
 0x16b   : > { %1910 = vrsqrt.f32 %v565_v11  ;;  %1683 = vmatprep.subr.mxu1 %v877_v6 }
 0x16c   : > { %1912 = vrsqrt.f32 %v566_v12  ;;  %1684 = vmatpush3.msra.mxu1 %v877_v6  ;;  %v875_v12 = vld [vmem:[#allocation13 + $0x50] sm:$0xff]  ;;  %v1087_v6 = vld [vmem:[#allocation16 + $0x20] sm:$0xff] }
 0x16d   : > { %1685 = vmatprep.subr.mxu1 %v876_v10 }
 0x16e   : > { %1686 = vmatpush3.msra.mxu1 %v876_v10  ;;  %v1084_v10 = vld [vmem:[#allocation16 + $0x8] sm:$0xff] }
 0x16f   : > { %1687 = vmatprep.subr.mxu1 %v875_v12 }
 0x170   : > { %v1907_v14 = vpop.eup %1906  ;;  %1688 = vmatpush3.msra.mxu1 %v875_v12 }
 0x171   : > { %v575_v16 = vmul.f32 %v1907_v14, %v571_v13  ;;  %v874_v13 = vld [vmem:[#allocation13 + $0x48] sm:$0xff]  ;;  %v873_v14 = vld [vmem:[#allocation13 + $0x40] sm:$0xff] }
 0x172   : > { %1689 = vmatprep.subr.mxu1 %v874_v13 }
 0x173   : > { %v583_v19 = vmul.f32 %v1436_v15, %v575_v16  ;;  %1690 = vmatpush3.msra.mxu1 %v874_v13 }
 0x174   : > { %v1909_v20 = vpop.eup %1908  ;;  %1691 = vmatprep.subr.mxu1 %v873_v14 }
 0x175   : > { %v591_v21 = vadd.f32 %v1437_v17, %v583_v19  ;;  %v576_v22 = vmul.f32 %v1909_v20, %v572_v18  ;;  %1692 = vmatpush3.msra.mxu1 %v873_v14  ;;  %v870_v20 = vld [vmem:[#allocation13 + $0x28] sm:$0xff] }
 0x177   : > { %1595 = vmatprep.mubr.f32.mxu0 %v591_v21  ;;  %v584_v24 = vmul.f32 %v1436_v15, %v576_v22 }
 0x178   : > { %v1911_v25 = vpop.eup %1910 }
 0x179   : > { %v1913_v27 = vpop.eup %1912  ;;  %v592_v28 = vadd.f32 %v1437_v17, %v584_v24  ;;  %v577_v1 = vmul.f32 %v1911_v25, %v573_v23  ;;  %v869_v23 = vld [vmem:[#allocation13 + $0x20] sm:$0xff] }
 0x17a   : > { %v578_v29 = vmul.f32 %v1913_v27, %v574_v26  ;;  %v868_v26 = vld [vmem:[#allocation13 + $0x18] sm:$0xff] }
 0x17b   : > { %1596 = vmatmul.mubr.f32.vlgmr.msra.gmra.mxu0 %v592_v28  ;;  %v585_v31 = vmul.f32 %v1436_v15, %v577_v1  ;;  %v867_v28 = vld [vmem:[#allocation13 + $0x10] sm:$0xff]  ;;  %v866_v1 = vld [vmem:[#allocation13 + $0x8] sm:$0xff] }
 0x17c   : > { %v586_v32 = vmul.f32 %v1436_v15, %v578_v29  ;;  %1640 = vmatpush3.msra.mxu0 %v896_v49  ;;  %v872_v15 = vld [vmem:[#allocation13 + $0x38] sm:$0xff]  ;;  %v865_v29 = vld [vmem:[#allocation13] sm:$0xff] }
 0x17d   : > { %v593_v33 = vadd.f32 %v1437_v17, %v585_v31  ;;  %1641 = vmatprep.subr.mxu0 %v895_v30  ;;  %1693 = vmatprep.subr.mxu1 %v872_v15  ;;  %v2693_v31 = vld [vmem:[#allocation16 + $0x70] sm:$0xff] }
 0x17e   : > { %v594_v34 = vadd.f32 %v1437_v17, %v586_v32  ;;  %1642 = vmatpush3.msra.mxu0 %v895_v30  ;;  %1694 = vmatpush3.msra.mxu1 %v872_v15  ;;  %v871_v17 = vld [vmem:[#allocation13 + $0x30] sm:$0xff]  ;;  %v2691_v30 = vld [vmem:[#allocation16 + $0x78] sm:$0xff]  ;;  %v2698_v32 = vld [vmem:[#allocation16 + $0x68] sm:$0xff] }
 0x17f   : > { %1598 = vmatprep.mubr.f32.mxu0 %v593_v33  ;;  %1643 = vmatprep.subr.mxu0 %v894_v5  ;;  %v2706_v33 = vld [vmem:[#allocation16 + $0x58] sm:$0xff] }
 0x180   : > { %1599 = vmatmul.mubr.f32.gmra.mxu0 %v594_v34  ;;  %1695 = vmatprep.subr.mxu1 %v871_v17  ;;  %v2710_v34 = vld [vmem:[#allocation16 + $0x50] sm:$0xff]  ;;  %v1448_v15 = vld [vmem:[#allocation8 + $0x4] ss:$0 sm:$0xff] }
 0x181   : > { %1644 = vmatpush3.msra.mxu0 %v894_v5  ;;  %1696 = vmatpush3.msra.mxu1 %v871_v17  ;;  %v2702_v5 = vld [vmem:[#allocation16 + $0x60] sm:$0xff] }
 0x182   : > { %1645 = vmatprep.subr.mxu0 %v893_v8  ;;  %1697 = vmatprep.subr.mxu1 %v870_v20 }
 0x183   : > { %1646 = vmatpush3.msra.mxu0 %v893_v8  ;;  %1698 = vmatpush3.msra.mxu1 %v870_v20  ;;  %v2714_v8 = vld [vmem:[#allocation16 + $0x48] sm:$0xff] }
 0x184   : > { %1647 = vmatprep.subr.mxu0 %v892_v0  ;;  %1699 = vmatprep.subr.mxu1 %v869_v23 }
 0x185   : > { %1648 = vmatpush3.msra.mxu0 %v892_v0  ;;  %1700 = vmatpush3.msra.mxu1 %v869_v23  ;;  %v2718_v0 = vld [vmem:[#allocation16 + $0x40] sm:$0xff] }
 0x186   : > { %1649 = vmatprep.subr.mxu0 %v891_v35  ;;  %1701 = vmatprep.subr.mxu1 %v868_v26 }
 0x187   : > { %1650 = vmatpush3.msra.mxu0 %v891_v35  ;;  %1702 = vmatpush3.msra.mxu1 %v868_v26  ;;  %v2722_v35 = vld [vmem:[#allocation16 + $0x38] sm:$0xff] }
 0x188   : > { %1651 = vmatprep.subr.mxu0 %v890_v36  ;;  %1703 = vmatprep.subr.mxu1 %v867_v28 }
 0x189   : > { %1652 = vmatpush3.msra.mxu0 %v890_v36  ;;  %1704 = vmatpush3.msra.mxu1 %v867_v28  ;;  %v2726_v36 = vld [vmem:[#allocation16 + $0x30] sm:$0xff] }
 0x18a   : > { %1653 = vmatprep.subr.mxu0 %v889_v37  ;;  %1705 = vmatprep.subr.mxu1 %v866_v1 }
 0x18b   : > { %1654 = vmatpush3.msra.mxu0 %v889_v37  ;;  %1706 = vmatpush3.msra.mxu1 %v866_v1  ;;  %v2730_v37 = vld [vmem:[#allocation16 + $0x28] sm:$0xff] }
 0x18c   : > { %1655 = vmatprep.subr.mxu0 %v888_v38  ;;  %1707 = vmatprep.subr.mxu1 %v865_v29 }
 0x18d   : > { %1656 = vmatpush3.msra.mxu0 %v888_v38  ;;  %1708 = vmatpush3.msra.mxu1 %v865_v29  ;;  %v1438_v38 = vld [vmem:[#allocation8 + $0x2] ss:$0 sm:$0xff] }
 0x18e   : > { %1657 = vmatprep.subr.mxu0 %v887_v39  ;;  %1753 = vmatprep.subr.mxu1 %v2691_v30 }
 0x18f   : > { %1658 = vmatpush3.msra.mxu0 %v887_v39 }
 0x190   : > { %1659 = vmatprep.subr.mxu0 %v886_v40 }
 0x191   : > { %1660 = vmatpush3.msra.mxu0 %v886_v40 }
 0x192   : > { %1661 = vmatprep.subr.mxu0 %v885_v41 }
 0x193   : > { %1662 = vmatpush3.msra.mxu0 %v885_v41 }
 0x194   : > { %1663 = vmatprep.subr.mxu0 %v884_v42 }
 0x195   : > { %1664 = vmatpush3.msra.mxu0 %v884_v42 }
 0x196   : > { %1665 = vmatprep.subr.mxu0 %v883_v43 }
 0x197   : > { %1666 = vmatpush3.msra.mxu0 %v883_v43 }
 0x198   : > { %1667 = vmatprep.subr.mxu0 %v882_v56 }
 0x199   : > { %1668 = vmatpush3.msra.mxu0 %v882_v56 }
 0x19a   : > { %1669 = vmatprep.subr.mxu0 %v881_v58 }
 0x19b   : > { %1670 = vmatpush3.msra.mxu0 %v881_v58 }
 0x19c   : > { %1715 = vmatprep.subr.mxu0 %v2691_v30 }
 0x1b3   : > { %v1635_v45 = vpop.f32.mrf.mxu1 }
 0x1b4   : > { %v2675_v46 = vadd.f32 %v1635_v45, %v1443_v44 }
 0x1b5   : > { %v818_v47 = vpop.f32.mrf.mxu1 }
 0x1b6   : > { %v1445_v48 = vmul.f32 -1.442695, %v2675_v46  ;;  %v2678_v49 = vadd.f32 %v1443_v44, %v818_v47 }
 0x1b7   : > { %v1638_v50 = vpop.f32.mrf.mxu1 }
 0x1b8   : > { %1914 = vpow2.f32 %v1445_v48  ;;  %v1444_v51 = vmul.f32 -1.442695, %v2678_v49  ;;  %v2681_v52 = vadd.f32 %v1638_v50, %v1443_v44 }
 0x1b9   : > { %v828_v53 = vpop.f32.mrf.mxu1 }
 0x1ba   : > { %1916 = vpow2.f32 %v1444_v51  ;;  %v1447_v54 = vmul.f32 -1.442695, %v2681_v52  ;;  %v2684_v55 = vadd.f32 %v1443_v44, %v828_v53 }
 0x1bc   : > { %1918 = vpow2.f32 %v1447_v54  ;;  %v1446_v57 = vmul.f32 -1.442695, %v2684_v55 }
 0x1be   : > { %1920 = vpow2.f32 %v1446_v57 }
 0x1c5   : > { %v1915_v60 = vpop.eup %1914 }
 0x1c6   : > { %v850_v62 = vadd.f32 1.0, %v1915_v60 }
 0x1c7   : > { %v1917_v63 = vpop.eup %1916 }
 0x1c8   : > { %1922 = vrcp.f32 %v850_v62  ;;  %v849_v3 = vadd.f32 1.0, %v1917_v63 }
 0x1c9   : > { %v1919_v4 = vpop.eup %1918 }
 0x1ca   : > { %1924 = vrcp.f32 %v849_v3  ;;  %v852_v7 = vadd.f32 1.0, %v1919_v4 }
 0x1cb   : > { %v1921_v9 = vpop.eup %1920 }
 0x1cc   : > { %1926 = vrcp.f32 %v852_v7  ;;  %v851_v11 = vadd.f32 1.0, %v1921_v9  ;;  %v1086_v7 = vld [vmem:[#allocation16 + $0x18] sm:$0xff]  ;;  %v1085_v9 = vld [vmem:[#allocation16 + $0x10] sm:$0xff] }
 0x1ce   : > { %1928 = vrcp.f32 %v851_v11  ;;  %v1083_v11 = vld [vmem:[#allocation16] sm:$0xff] }
 0x1d5   : > { %v1923_v16 = vpop.eup %1922 }
 0x1d6   : > { %v862_v19 = vmul.f32 %v1923_v16, %v2675_v46 }
 0x1d7   : > { %v1925_v18 = vpop.eup %1924 }
 0x1d8   : > { %v861_v21 = vmul.f32 %v1925_v18, %v2678_v49 }
 0x1d9   : > { %v1927_v22 = vpop.eup %1926 }
 0x1da   : > { %1671 = vmatprep.mubr.f32.mxu0 %v861_v21  ;;  %v864_v25 = vmul.f32 %v1927_v22, %v2681_v52  ;;  %v1075_v21 = vld [vmem:[%s2626_s7] sm:$0xff]  ;;  %v1076_v22 = vld [vmem:[%s2626_s7 + $0x8] sm:$0xff] }
 0x1db   : > { %v1929_v24 = vpop.eup %1928  ;;  %1672 = vmatmul.mubr.f32.vlgmr.msra.gmra.mxu0 %v862_v19 }
 0x1dc   : > { %v863_v27 = vmul.f32 %v1929_v24, %v2684_v55  ;;  %1716 = vmatpush3.msra.mxu0 %v2691_v30 }
 0x1dd   : > { %1717 = vmatprep.subr.mxu0 %v2693_v31 }
 0x1de   : > { %1674 = vmatprep.mubr.f32.mxu0 %v863_v27  ;;  %1718 = vmatpush3.msra.mxu0 %v2693_v31 }
 0x1df   : > { %1675 = vmatmul.mubr.f32.gmra.mxu0 %v864_v25  ;;  %1719 = vmatprep.subr.mxu0 %v2698_v32 }
 0x1e0   : > { %1720 = vmatpush3.msra.mxu0 %v2698_v32 }
 0x1e1   : > { %1721 = vmatprep.subr.mxu0 %v2702_v5 }
 0x1e2   : > { %1722 = vmatpush3.msra.mxu0 %v2702_v5 }
 0x1e3   : > { %1723 = vmatprep.subr.mxu0 %v2706_v33 }
 0x1e4   : > { %1724 = vmatpush3.msra.mxu0 %v2706_v33 }
 0x1e5   : > { %1725 = vmatprep.subr.mxu0 %v2710_v34 }
 0x1e6   : > { %1726 = vmatpush3.msra.mxu0 %v2710_v34 }
 0x1e7   : > { %1727 = vmatprep.subr.mxu0 %v2714_v8 }
 0x1e8   : > { %1728 = vmatpush3.msra.mxu0 %v2714_v8 }
 0x1e9   : > { %1729 = vmatprep.subr.mxu0 %v2718_v0 }
 0x1ea   : > { %1730 = vmatpush3.msra.mxu0 %v2718_v0 }
 0x1eb   : > { %1731 = vmatprep.subr.mxu0 %v2722_v35 }
 0x1ec   : > { %1732 = vmatpush3.msra.mxu0 %v2722_v35 }
 0x1ed   : > { %1733 = vmatprep.subr.mxu0 %v2726_v36 }
 0x1ee   : > { %1734 = vmatpush3.msra.mxu0 %v2726_v36 }
 0x1ef   : > { %1735 = vmatprep.subr.mxu0 %v2730_v37 }
 0x1f0   : > { %1736 = vmatpush3.msra.mxu0 %v2730_v37 }
 0x1f1   : > { %1737 = vmatprep.subr.mxu0 %v1087_v6 }
 0x1f2   : > { %1738 = vmatpush3.msra.mxu0 %v1087_v6 }
 0x1f3   : > { %1739 = vmatprep.subr.mxu0 %v1086_v7 }
 0x1f4   : > { %1740 = vmatpush3.msra.mxu0 %v1086_v7 }
 0x1f5   : > { %1741 = vmatprep.subr.mxu0 %v1085_v9 }
 0x1f6   : > { %1742 = vmatpush3.msra.mxu0 %v1085_v9 }
 0x1f7   : > { %1743 = vmatprep.subr.mxu0 %v1084_v10 }
 0x1f8   : > { %1744 = vmatpush3.msra.mxu0 %v1084_v10 }
 0x1f9   : > { %1745 = vmatprep.subr.mxu0 %v1083_v11 }
 0x1fa   : > { %1746 = vmatpush3.msra.mxu0 %v1083_v11 }
 0x23b   : > { %v1597_v39 = vpop.f32.mrf.mxu0 }
 0x23c   : > { %v687_v40 = vadd.f32 %v1597_v39, %v1438_v38 }
 0x23d   : > { %v681_v41 = vpop.f32.mrf.mxu0 }
 0x23e   : > { %v1440_v42 = vmul.f32 -1.442695, %v687_v40  ;;  %v682_v43 = vadd.f32 %v1438_v38, %v681_v41 }
 0x240   : > { %1930 = vpow2.f32 %v1440_v42  ;;  %v1439_v44 = vmul.f32 -1.442695, %v682_v43  ;;  %v1600_v45 = vpop.f32.mrf.mxu0 }
 0x241   : > { %v697_v46 = vadd.f32 %v1600_v45, %v1438_v38 }
 0x242   : > { %1932 = vpow2.f32 %v1439_v44  ;;  %v691_v47 = vpop.f32.mrf.mxu0 }
 0x243   : > { %v1442_v48 = vmul.f32 -1.442695, %v697_v46  ;;  %v692_v49 = vadd.f32 %v1438_v38, %v691_v47 }
 0x245   : > { %1934 = vpow2.f32 %v1442_v48  ;;  %v1441_v50 = vmul.f32 -1.442695, %v692_v49 }
 0x247   : > { %1936 = vpow2.f32 %v1441_v50 }
 0x24d   : > { %v1931_v51 = vpop.eup %1930 }
 0x24e   : > { %v713_v52 = vadd.f32 1.0, %v1931_v51 }
 0x24f   : > { %v1933_v53 = vpop.eup %1932 }
 0x250   : > { %v712_v54 = vadd.f32 1.0, %v1933_v53  ;;  %1938 = vrcp.f32 %v713_v52 }
 0x252   : > { %v1935_v55 = vpop.eup %1934  ;;  %1940 = vrcp.f32 %v712_v54 }
 0x253   : > { %v715_v56 = vadd.f32 1.0, %v1935_v55 }
 0x254   : > { %v1937_v57 = vpop.eup %1936 }
 0x255   : > { %v714_v58 = vadd.f32 1.0, %v1937_v57  ;;  %1942 = vrcp.f32 %v715_v56 }
 0x257   : > { %1944 = vrcp.f32 %v714_v58 }
 0x25d   : > { %v1939_v59 = vpop.eup %1938 }
 0x25e   : > { %v725_v62 = vmul.f32 %v1939_v59, %v687_v40 }
 0x25f   : > { %v1941_v60 = vpop.eup %1940 }
 0x260   : > { %v724_v61 = vmul.f32 %v1941_v60, %v682_v43 }
 0x262   : > { %1709 = vmatprep.mubr.f32.mxu1 %v724_v61  ;;  %v1943_v63 = vpop.eup %1942 }
 0x263   : > { %1710 = vmatmul.mubr.f32.vlgmr.msra.gmra.mxu1 %v725_v62  ;;  %v727_v4 = vmul.f32 %v1943_v63, %v697_v46 }
 0x264   : > { %v1945_v2 = vpop.eup %1944  ;;  %1769 = vmatpush3.msra.mxu1 %v2691_v30 }
 0x265   : > { %v726_v3 = vmul.f32 %v1945_v2, %v692_v49  ;;  %1754 = vmatprep.subr.mxu1 %v2693_v31 }
 0x266   : > { %1770 = vmatpush3.msra.mxu1 %v2693_v31  ;;  %v1077_v31 = vld [vmem:[%s2626_s7 + $0x10] sm:$0xff] }
 0x267   : > { %1712 = vmatprep.mubr.f32.mxu1 %v726_v3  ;;  %1755 = vmatprep.subr.mxu1 %v2698_v32 }
 0x268   : > { %1713 = vmatmul.mubr.f32.gmra.mxu1 %v727_v4 }
 0x269   : > { %1771 = vmatpush3.msra.mxu1 %v2698_v32  ;;  %v1078_v32 = vld [vmem:[%s2626_s7 + $0x18] sm:$0xff] }
 0x26a   : > { %1756 = vmatprep.subr.mxu1 %v2702_v5 }
 0x26b   : > { %1772 = vmatpush3.msra.mxu1 %v2702_v5 }
 0x26c   : > { %1757 = vmatprep.subr.mxu1 %v2706_v33 }
 0x26d   : > { %1773 = vmatpush3.msra.mxu1 %v2706_v33 }
 0x26e   : > { %1758 = vmatprep.subr.mxu1 %v2710_v34 }
 0x26f   : > { %1774 = vmatpush3.msra.mxu1 %v2710_v34 }
 0x270   : > { %1759 = vmatprep.subr.mxu1 %v2714_v8 }
 0x271   : > { %1775 = vmatpush3.msra.mxu1 %v2714_v8  ;;  %v1449_v8 = vld [vmem:[#allocation8 + $0x5] ss:$0 sm:$0xff] }
 0x272   : > { %1760 = vmatprep.subr.mxu1 %v2718_v0 }
 0x273   : > { %1776 = vmatpush3.msra.mxu1 %v2718_v0 }
 0x274   : > { %1761 = vmatprep.subr.mxu1 %v2722_v35 }
 0x275   : > { %1777 = vmatpush3.msra.mxu1 %v2722_v35 }
 0x276   : > { %1762 = vmatprep.subr.mxu1 %v2726_v36 }
 0x277   : > { %1778 = vmatpush3.msra.mxu1 %v2726_v36 }
 0x278   : > { %1763 = vmatprep.subr.mxu1 %v2730_v37 }
 0x279   : > { %1779 = vmatpush3.msra.mxu1 %v2730_v37 }
 0x27a   : > { %1764 = vmatprep.subr.mxu1 %v1087_v6 }
 0x27b   : > { %1780 = vmatpush3.msra.mxu1 %v1087_v6 }
 0x27c   : > { %1765 = vmatprep.subr.mxu1 %v1086_v7 }
 0x27d   : > { %1781 = vmatpush3.msra.mxu1 %v1086_v7 }
 0x27e   : > { %1766 = vmatprep.subr.mxu1 %v1085_v9 }
 0x27f   : > { %1782 = vmatpush3.msra.mxu1 %v1085_v9 }
 0x280   : > { %1767 = vmatprep.subr.mxu1 %v1084_v10 }
 0x281   : > { %1783 = vmatpush3.msra.mxu1 %v1084_v10 }
 0x282   : > { %1768 = vmatprep.subr.mxu1 %v1083_v11 }
 0x283   : > { %1784 = vmatpush3.msra.mxu1 %v1083_v11 }
 0x29b   : > { %v1673_v12 = vpop.f32.mrf.mxu0 }
 0x29d   : > { %v963_v13 = vpop.f32.mrf.mxu0 }
 0x29f   : > { %v1676_v18 = vpop.f32.mrf.mxu0 }
 0x2a1   : > { %v973_v26 = vpop.f32.mrf.mxu0 }
 0x323   : > { %v1711_v14 = vpop.f32.mrf.mxu1 }
 0x324   : > { %v1054_v16 = vadd.f32 %v1711_v14, %v1673_v12 }
 0x325   : > { %v1048_v17 = vpop.f32.mrf.mxu1 }
 0x326   : > { %v1049_v19 = vadd.f32 %v1048_v17, %v963_v13  ;;  %v1072_v20 = vadd.f32 %v1448_v15, %v1054_v16 }
 0x328   : > { %v1071_v23 = vadd.f32 %v1448_v15, %v1049_v19  ;;  %v1714_v24 = vpop.f32.mrf.mxu1  ;;  %v1080_v1 = vadd.f32 %v1076_v22, %v1072_v20 }
 0x329   : > { %v1064_v25 = vadd.f32 %v1714_v24, %v1676_v18 }
 0x32a   : > { %v1058_v27 = vpop.f32.mrf.mxu1  ;;  %v1079_v28 = vadd.f32 %v1075_v21, %v1071_v23 }
 0x32b   : > { %v1059_v29 = vadd.f32 %v1058_v27, %v973_v26  ;;  %v1074_v30 = vadd.f32 %v1448_v15, %v1064_v25 }
 0x32c   : > { %1747 = vmatprep.mubr.f32.mxu0 %v1079_v28 }
 0x32d   : > { %v1073_v5 = vadd.f32 %v1448_v15, %v1059_v29  ;;  %1748 = vmatmul.mubr.f32.vlgmr.msra.gmra.mxu0 %v1080_v1  ;;  %v1082_v34 = vadd.f32 %v1078_v32, %v1074_v30 }
 0x32f   : > { %v1081_v33 = vadd.f32 %v1077_v31, %v1073_v5 }
 0x331   : > { %1750 = vmatprep.mubr.f32.mxu1 %v1081_v33 }
 0x332   : > { %1751 = vmatmul.mubr.f32.vlgmr.msra.gmra.mxu1 %v1082_v34 }
 0x3ed   : > { %v1749_v0 = vpop.f32.mrf.mxu0 }
 0x3ee   : > { %v1175_v35 = vadd.f32 %v1749_v0, %v1449_v8 }
 0x3ef   : > { %v1169_v36 = vpop.f32.mrf.mxu0 }
 0x3f0   : > { %v1451_v37 = vmul.f32 -1.442695, %v1175_v35  ;;  %v1170_v38 = vadd.f32 %v1449_v8, %v1169_v36 }
 0x3f2   : > { %1946 = vpow2.f32 %v1451_v37  ;;  %v1450_v39 = vmul.f32 -1.442695, %v1170_v38  ;;  %v1752_v40 = vpop.f32.mrf.mxu1 }
 0x3f3   : > { %v1185_v41 = vadd.f32 %v1752_v40, %v1449_v8 }
 0x3f4   : > { %1948 = vpow2.f32 %v1450_v39  ;;  %v1179_v42 = vpop.f32.mrf.mxu1 }
 0x3f5   : > { %v1453_v43 = vmul.f32 -1.442695, %v1185_v41  ;;  %v1180_v44 = vadd.f32 %v1449_v8, %v1179_v42 }
 0x3f7   : > { %1950 = vpow2.f32 %v1453_v43  ;;  %v1452_v45 = vmul.f32 -1.442695, %v1180_v44 }
 0x3f9   : > { %1952 = vpow2.f32 %v1452_v45 }
 0x3ff   : > { %v1947_v46 = vpop.eup %1946 }
 0x400   : > { %v1201_v47 = vadd.f32 1.0, %v1947_v46 }
 0x401   : > { %v1949_v48 = vpop.eup %1948 }
 0x402   : > { %1954 = vrcp.f32 %v1201_v47  ;;  %v1200_v49 = vadd.f32 1.0, %v1949_v48 }
 0x404   : > { %v1951_v50 = vpop.eup %1950  ;;  %1956 = vrcp.f32 %v1200_v49 }
 0x405   : > { %v1203_v51 = vadd.f32 1.0, %v1951_v50 }
 0x406   : > { %v1953_v52 = vpop.eup %1952 }
 0x407   : > { %1958 = vrcp.f32 %v1203_v51  ;;  %v1202_v53 = vadd.f32 1.0, %v1953_v52 }
 0x409   : > { %1960 = vrcp.f32 %v1202_v53 }
 0x40f   : > { %v1955_v54 = vpop.eup %1954 }
 0x410   : > { %v1213_v55 = vmul.f32 %v1955_v54, %v1175_v35 }
 0x411   : > { %v1957_v56 = vpop.eup %1956 }
 0x412   : > { %1217 = vst [vmem:[%s512_s21 + $0x8] sm:$0xff] %v1213_v55  ;;  %v1212_v57 = vmul.f32 %v1957_v56, %v1170_v38 }
 0x414   : > { %v1959_v58 = vpop.eup %1958  ;;  %1216 = vst [vmem:[%s512_s21] sm:$0xff] %v1212_v57 }
 0x415   : > { %v1215_v59 = vmul.f32 %v1959_v58, %v1185_v41 }
 0x416   : > { %v1961_v60 = vpop.eup %1960 }
 0x417   : > { %1219 = vst [vmem:[%s512_s21 + $0x18] sm:$0xff] %v1215_v59  ;;  %v1214_v61 = vmul.f32 %v1961_v60, %v1180_v44 }
 0x419   : > { %1218 = vst [vmem:[%s512_s21 + $0x10] sm:$0xff] %v1214_v61 }
 0x41a   : > { %2215 = shalt.err (!%p2212_p8)
}
 0x41b   : > { %s2216_s27 = scalar_lea.hbm %s2768_s25, 512  ;;  %s2220_s23 = scalar_lea.hbm %s2820_s9, 1024 }
 0x41c   : > { %p2217_p12 = scmp.ne.s32.totalorder %s2768_s25, %s2216_s27  ;;  %p2221_p2 = scmp.lt.s32.totalorder %s2768_s25, %s2820_s9 }
 0x41d   : > { %p2222_p11 = scmp.lt.s32.totalorder %s2220_s23, %s2216_s27 }
 0x41e   : > { %p2218_p9 = pnand %p2217_p12, %p2871_p1 }
 0x41f   : > { %p2223_p4 = por %p2222_p11, %p2221_p2 }
 0x420   : > { %p2219_p0 = pneg %p2218_p9 }
 0x422   : > { %p2224_p13 = pnand %p2223_p4, %p2219_p0 }
 0x424   : > { %2227 = shalt.err (!%p2224_p13)
}
 0x425   : > { %s2296_s16 = smov 128   ;;  %s2297_s7 = smov 8  }
 0x426   : > { %1815 = dma.vmem_to_hbm [thread:$0]  (%p2871_p1), %s2763_s22, 512, %s2768_s25, %s1221_s18, %s2296_s16, %s2296_s16, %s2297_s7  }
 0x427 PF: > { %s2872_s12 = sld [smem:[#allocation27_spill]]  ;;  %s1249_s19 = sand.u32 1, %s2270_s30  }
 0x428   : > { %s2873_s21 = sld [smem:[#allocation24_spill]]  ;;  %s1250_s14 = scalar_lea.sflag [#allocation4], %s1249_s19 }
 0x42d   : > { %p2874_p3 = scmp.ne.s32.totalorder %s2872_s12, 0 }
 0x42e   : > { %p2875_p6 = scmp.ge.s32.totalorder %s2873_s21, 2 }
 0x430   : > { %p1847_p7 = pnand %p2875_p6, %p2874_p3 }
 0x432   : > { %p1848_p5 = pneg %p1847_p7 }
 0x434   : > { %2265 = dma.done.wait (%p1848_p5), %s1250_s14, 512  }
 0x435   : > { %2267 = vsyncadd (%p1848_p5), %s1250_s14, 4294966784  ;;  %s2876_s12 = sld [smem:[#allocation25_spill]]  ;;  %s2878_s30 = smov %s2274_s10 }
 0x436   : > { %s2877_s3 = sld [smem:[#allocation26_spill]]  ;;  %s2879_s10 = smov %s2278_s11 }
 0x43b   : > { %p28_p10 = scmp.ge.s32.totalorder %s2876_s12, 4  }
 0x43c   : > { %s2880_s11 = smov %s2877_s3 }
 0x43d   :  { %30 = sbr.rel (!%p28_p10) target bundleno = 15 (0xf), region = 149 }
 0x442   :  { %1255 = vsyncpa [#allocation3], 1 }
 0x443   :  { %1257 = vsyncpa [#allocation3 + $0x1], 1 }
 0x444   :  { %1258 = vsyncpa [#allocation6], 1 }
 0x445   :  { %1260 = vsyncpa [#allocation6 + $0x1], 1 }
 0x446   :  { %1261 = vsyncpa [#allocation9], 1 }
 0x447   :  { %1262 = vsyncpa [#allocation12], 1 }
 0x448   :  { %1263 = vsyncpa [#allocation15], 1 }
 0x449   :  { %1264 = vsyncpa [#allocation4], 1 }
 0x44a   :  { %1266 = vsyncpa [#allocation4 + $0x1], 1 }

// kernel: tpu_custom_call.1
= control target key start
LH: loop header
LB: loop body
LE: loop exit
PB: predicated region body
PF: predicated region fallthrough
CT: control target
= control target key end

     0   :  { %s2811_s0 = inlined_call_operand.hbm [shape: f32[64,128], index: 0, kind: input, shape index: {}]   ;;  %s2812_s1 = inlined_call_operand.hbm [shape: f32[64,128], index: 1, kind: input, shape index: {}]   ;;  %s2813_s2 = inlined_call_operand.hbm [shape: f32[64,128], index: 2, kind: input, shape index: {}]   ;;  %s2814_s3 = inlined_call_operand.hbm [shape: f32[8,128], index: 3, kind: input, shape index: {}]   ;;  %s2815_s4 = inlined_call_operand.hbm [shape: f32[128,128], index: 4, kind: input, shape index: {}]   ;;  %s2816_s5 = inlined_call_operand.hbm [shape: f32[128,128], index: 5, kind: input, shape index: {}]   ;;  %s2817_s6 = inlined_call_operand.hbm [shape: f32[128,128], index: 6, kind: input, shape index: {}]   ;;  %s2818_s7 = inlined_call_operand.hbm [shape: f32[128,128], index: 7, kind: input, shape index: {}]   ;;  %s2819_s8 = inlined_call_operand.hbm [shape: f32[128,128], index: 8, kind: input, shape index: {}]   ;;  %s2820_s9 = inlined_call_operand.hbm [shape: f32[64,128], index: 9, kind: output, shape index: {}]  }
   0x1   :  { %2838 = sst [smem:[#allocation28_spill]] %s2812_s1 }
   0x2   :  { %2839 = sst [smem:[#allocation29_spill]] %s2814_s3 }
   0x3   :  { %2840 = sst [smem:[#allocation30_spill]] %s2816_s5 }
   0x4   :  { %2841 = sst [smem:[#allocation31_spill]] %s2818_s7 }
   0x5   :  { %14 = vsyncpa [#allocation3], 0 }
   0x6   :  { %16 = vsyncpa [#allocation3 + $0x1], 0 }
   0x7   :  { %17 = vsyncpa [#allocation6], 0 }
   0x8   :  { %19 = vsyncpa [#allocation6 + $0x1], 0 }
   0x9   :  { %20 = vsyncpa [#allocation9], 0 }
   0xa   :  { %21 = vsyncpa [#allocation12], 0 }
   0xb   :  { %22 = vsyncpa [#allocation15], 0 }
   0xc   :  { %23 = vsyncpa [#allocation4], 0 }
   0xd   :  { %25 = vsyncpa [#allocation4 + $0x1], 0  ;;  %s2348_s30 = smov 0   ;;  %s2350_s10 = smov 0  }
   0xe   :  { %s2352_s11 = smov 0   ;;  %s2354_s12 = smov 0  }
   0xf LB: > { %2842 = sst [smem:[#allocation24_spill]] %s2282_s12  ;;  %s2284_s13 = smov [#allocation8]   ;;  %s2282_s12 = sphi %s2354_s12, %s2876_s12   ;;  %s2278_s11 = sphi %s2352_s11, %s2880_s11   ;;  %s2274_s10 = sphi %s2350_s10, %s2879_s10   ;;  %s2270_s30 = sphi %s2348_s30, %s2878_s30  }
  0x10   : > { %s279_s14 = sshll.u32 %s2284_s13, 4  ;;  %s2369_s15 = sadd.s32 4294967295, %s2282_s12   ;;  %s280_s14 = int_to_ptr.vmem [resolvable:$true] %s279_s14 }
  0x11   : > { %p1408_p0 = scmp.ge.s32.totalorder %s2282_s12, 1  ;;  %p2830_p1 = scmp.eq.s32.totalorder %s2369_s15, 0 }
  0x12   : > { %p266_p2 = scmp.lt.s32.totalorder %s2282_s12, 3  ;;  %s2285_s17 = smov [#allocation11]  }
  0x13   : > { %s302_s18 = sshll.u32 %s2285_s17, 4  ;;  %s2286_s20 = smov [#allocation14]   ;;  %s2387_s18 = int_to_ptr.vmem [resolvable:$true] %s302_s18 }
  0x14   : > { %p2374_p3 = pnand %p1408_p0, %p266_p2  ;;  %s328_s21 = sshll.u32 %s2286_s20, 4  ;;  %s2389_s21 = int_to_ptr.vmem [resolvable:$true] %s328_s21 }
  0x15   : > { %s1973_s23 = scalar_lea.vmem %s280_s14, 128  ;;  %p1981_p11 = scmp.lt.s32.totalorder %s280_s14, %s280_s14 }
  0x16   : > { %s2843_s16 = scalar_select %p2374_p3, 1, 0 }
  0x17   : > { %p1817_p5 = pneg %p2374_p3  ;;  %p1974_p8 = scmp.ne.s32.totalorder %s280_s14, %s1973_s23 }
  0x18   : > { %p1982_p12 = scmp.lt.s32.totalorder %s1973_s23, %s1973_s23 }
  0x19   : > { %p2383_p6 = pnand %p1817_p5, %p2830_p1 }
  0x1a   : > { %p1983_p13 = por %p1982_p12, %p1981_p11 }
  0x1b   : > { %s2844_s19 = scalar_select %p2383_p6, 1, 0 }
  0x1c   : > { %p2393_p7 = pneg %p2383_p6 }
  0x1e   : > { %s2845_s22 = scalar_select %p2393_p7, 1, 0 }
  0x1f   : > { %p1976_p9 = pnand %p1974_p8, %p2393_p7 }
  0x21   : > { %p1977_p10 = pneg %p1976_p9 }
  0x23   : > { %p1984_p0 = pnand %p1983_p13, %p1977_p10 }
  0x25   : > { %1987 = shalt.err (!%p1984_p0)
}
  0x26   : > { %s2846_s3 = sld [smem:[#allocation29_spill]]  ;;  %s1999_s26 = scalar_lea.vmem %s2387_s18, 2048 }
  0x27   : > { %p2000_p2 = scmp.ne.s32.totalorder %s2387_s18, %s1999_s26  ;;  %p2007_p9 = scmp.lt.s32.totalorder %s2387_s18, %s2387_s18 }
  0x28   : > { %p2008_p11 = scmp.lt.s32.totalorder %s1999_s26, %s1999_s26 }
  0x29   : > { %p2002_p5 = pnand %p2000_p2, %p2393_p7 }
  0x2a   : > { %p2009_p10 = por %p2008_p11, %p2007_p9 }
  0x2b   : > { %p2003_p8 = pneg %p2002_p5 }
  0x2c   : > { %1820 = dma.hbm_to_vmem [thread:$0]  (!%p2383_p6), %s2846_s3, 128, %s280_s14, [#allocation9]  }
  0x2d   : > { %p2010_p12 = pnand %p2009_p10, %p2003_p8 }
  0x2f   : > { %2013 = shalt.err (!%p2010_p12)
}
  0x30   : > { %s2822_s27 = smov 128   ;;  %s2824_s28 = smov 8  }
  0x31   : > { %s2847_s5 = sld [smem:[#allocation30_spill]]  ;;  %s2025_s14 = scalar_lea.vmem %s2389_s21, 2048 }
  0x32   : > { %p2026_p13 = scmp.ne.s32.totalorder %s2389_s21, %s2025_s14  ;;  %p2033_p5 = scmp.lt.s32.totalorder %s2389_s21, %s2389_s21 }
  0x33   : > { %p2034_p8 = scmp.lt.s32.totalorder %s2025_s14, %s2025_s14 }
  0x34   : > { %p2028_p0 = pnand %p2026_p13, %p2393_p7 }
  0x35   : > { %p2035_p9 = por %p2034_p8, %p2033_p5 }
  0x36   : > { %p2029_p2 = pneg %p2028_p0 }
  0x37   : > { %1826 = dma.hbm_to_vmem [thread:$0]  (!%p2383_p6), %s2847_s5, 2048, %s2387_s18, [#allocation12], %s2822_s27, %s2822_s27, %s2824_s28  }
  0x38   : > { %p2036_p11 = pnand %p2035_p9, %p2029_p2 }
  0x3a   : > { %2039 = shalt.err (!%p2036_p11)
}
  0x3b   : > { %s2848_s7 = sld [smem:[#allocation31_spill]]  ;;  %s1407_s18 = sadd.s32 4294967294, %s2282_s12  }
  0x3c   : > { %s2436_s23 = sadd.s32 1, %s2282_s12   ;;  %s38_s24 = sadd.s32 1, %s2278_s11 }
  0x3d   : > { %2849 = sst [smem:[#allocation25_spill]] %s2436_s23  ;;  %s35_s25 = ssub.s32 %s2282_s12, %s2436_s23 }
  0x3e   : > { %p45_p10 = scmp.ne.s32.totalorder %s2278_s11, %s2274_s10  ;;  %p36_p12 = scmp.eq.s32.totalorder %s35_s25, 0 }
  0x3f   : > { %p46_p13 = scmp.eq.s32.totalorder %s2282_s12, 0  ;;  %p51_p0 = scmp.ne.s32.totalorder %s2274_s10, %s2270_s30 }
  0x40   : > { %p253_p2 = scmp.eq.s32.totalorder %s2369_s15, 1  ;;  %p259_p11 = scmp.eq.s32.totalorder %s1407_s18, 1 }
  0x41   : > { %1832 = dma.hbm_to_vmem [thread:$0]  (!%p2383_p6), %s2848_s7, 2048, %s2389_s21, [#allocation15], %s2822_s27, %s2822_s27, %s2824_s28  }
  0x42   : > { %s2448_s26 = scalar_select %p36_p12, %s2278_s11, %s38_s24  }
  0x43   : > { %p47_p5 = por %p46_p13, %p45_p10  ;;  %p2452_p8 = por %p2830_p1, %p51_p0 }
  0x44   : > { %2850 = sst [smem:[#allocation26_spill]] %s2448_s26  ;;  %p2456_p9 = por %p253_p2, %p45_p10 }
  0x45   : > { %s2851_s21 = scalar_select %p2452_p8, 1, 0 }
  0x46   : > { %s2852_s29 = scalar_select %p2456_p9, 1, 0 }
  0x47   : > { %p1856_p4 = scmp.lt.s32.totalorder %s2282_s12, 2  ;;  %s2826_s13 = sand.u32 1, %s2278_s11  }
  0x48   : > { %p2462_p3 = por %p259_p11, %p51_p0  ;;  %s2468_s17 = sshll.u32 %s2826_s13, 5 }
  0x49   : > { %s2471_s20 = sshll.u32 %s2282_s12, 9  ;;  %p2473_p12 = pnand %p1856_p4, %p47_p5 }
  0x4a   : > { %s2853_s14 = scalar_select %p2462_p3, 1, 0 }
  0x4b   : > { %s376_s25 = sand.u32 1, %s2282_s12   ;;  %s2856_s1 = sld [smem:[#allocation28_spill]] }
  0x4c   : > { %2854 = sst [smem:[#allocation27_spill]] %s2853_s14  ;;  %s380_s13 = scalar_lea.vmem [#allocation5], %s2468_s17 }
  0x4d   : > { %s387_s3 = sshll.u32 %s380_s13, 4  ;;  %s2487_s5 = scalar_lea.sflag [#allocation6], %s376_s25  ;;  %s2485_s3 = int_to_ptr.vmem [resolvable:$true] %s387_s3 }
  0x4e   : > { %p2493_p10 = pneg %p2473_p12 }
  0x51   : > { %s2482_s28 = scalar_lea.hbm %s2856_s1, %s2471_s20  ;;  %s2045_s23 = scalar_lea.hbm %s2856_s1, 1024 }
  0x52   : > { %s2040_s7 = scalar_lea.hbm %s2482_s28, 512  ;;  %p2046_p2 = scmp.lt.s32.totalorder %s2482_s28, %s2856_s1 }
  0x53   : > { %p2041_p4 = scmp.ne.s32.totalorder %s2482_s28, %s2040_s7  ;;  %p2047_p5 = scmp.lt.s32.totalorder %s2045_s23, %s2040_s7 }
  0x55   : > { %p2043_p13 = pnand %p2493_p10, %p2041_p4  ;;  %p2048_p11 = por %p2047_p5, %p2046_p2 }
  0x57   : > { %p2044_p0 = pneg %p2043_p13 }
  0x59   : > { %p2049_p1 = pnand %p2048_p11, %p2044_p0 }
  0x5b   : > { %2052 = shalt.err (!%p2049_p1)
}
  0x5c   : > { %s2053_s25 = scalar_lea.vmem %s2485_s3, 512  ;;  %s2289_s14 = smov [#allocation5]  }
  0x5d   : > { %p2054_p3 = scmp.ne.s32.totalorder %s2485_s3, %s2053_s25  ;;  %s2058_s27 = sshll.u32 %s2289_s14, 4  ;;  %s2059_s27 = int_to_ptr.vmem [resolvable:$false] %s2058_s27 }
  0x5e   : > { %s2060_s18 = scalar_lea.vmem %s2059_s27, 1024  ;;  %p2061_p9 = scmp.lt.s32.totalorder %s2485_s3, %s2059_s27 }
  0x5f   : > { %p2056_p4 = pnand %p2054_p3, %p2493_p10  ;;  %p2062_p8 = scmp.lt.s32.totalorder %s2060_s18, %s2053_s25 }
  0x61   : > { %p2057_p13 = pneg %p2056_p4  ;;  %p2063_p6 = por %p2062_p8, %p2061_p9 }
  0x63   : > { %p2064_p7 = pnand %p2063_p6, %p2057_p13 }
  0x65   : > { %2067 = shalt.err (!%p2064_p7)
}
  0x66   : > { %s2858_s7 = smov 8   ;;  %s2859_s12 = smov 128  }
  0x67   : > { %1842 = dma.hbm_to_vmem [thread:$0]  (!%p2473_p12), %s2482_s28, 512, %s2485_s3, %s2487_s5, %s2859_s12, %s2859_s12, %s2858_s7  }
  0x68   : > { %s2290_s23 = smov [#allocation10]   ;;  %s2291_s14 = smov [#allocation13]  }
  0x69   : > { %s289_s13 = sshll.u32 %s2290_s23, 4  ;;  %s315_s1 = sshll.u32 %s2291_s14, 4  ;;  %s290_s13 = int_to_ptr.vmem [resolvable:$true] %s289_s13  ;;  %s316_s1 = int_to_ptr.vmem [resolvable:$true] %s315_s1 }
  0x6a   : > { %s2079_s27 = scalar_lea.vmem %s290_s13, 2048  ;;  %p2860_p3 = scmp.ne.s32.totalorder %s2845_s22, 0 }
  0x6b   : > { %p2080_p1 = scmp.ne.s32.totalorder %s290_s13, %s2079_s27  ;;  %p2087_p8 = scmp.lt.s32.totalorder %s290_s13, %s290_s13 }
  0x6c   : > { %p2088_p9 = scmp.lt.s32.totalorder %s2079_s27, %s2079_s27 }
  0x6d   : > { %p2082_p6 = pnand %p2080_p1, %p2860_p3 }
  0x6e   : > { %p2089_p0 = por %p2088_p9, %p2087_p8 }
  0x6f   : > { %p2083_p7 = pneg %p2082_p6 }
  0x71   : > { %p2090_p2 = pnand %p2089_p0, %p2083_p7 }
  0x73   : > { %2093 = shalt.err (!%p2090_p2)
}
  0x74   : > { %p2861_p5 = scmp.ne.s32.totalorder %s2844_s19, 0  ;;  %s2105_s25 = scalar_lea.vmem %s316_s1, 2048 }
  0x75   : > { %p2106_p11 = scmp.ne.s32.totalorder %s316_s1, %s2105_s25  ;;  %p2113_p1 = scmp.lt.s32.totalorder %s316_s1, %s316_s1 }
  0x76   : > { %1823 = dma.hbm_to_vmem [thread:$0]  (!%p2861_p5), %s2815_s4, 2048, %s290_s13, [#allocation9], %s2859_s12, %s2859_s12, %s2858_s7  }
  0x77   : > { %p2108_p4 = pnand %p2106_p11, %p2860_p3  ;;  %p2114_p6 = scmp.lt.s32.totalorder %s2105_s25, %s2105_s25 }
  0x79   : > { %p2109_p13 = pneg %p2108_p4  ;;  %p2115_p7 = por %p2114_p6, %p2113_p1 }
  0x7b   : > { %p2116_p8 = pnand %p2115_p7, %p2109_p13 }
  0x7d   : > { %2119 = shalt.err (!%p2116_p8)
}
  0x7e   : > { %1829 = dma.hbm_to_vmem [thread:$0]  (!%p2861_p5), %s2817_s6, 2048, %s316_s1, [#allocation12], %s2859_s12, %s2859_s12, %s2858_s7  }
  0x7f   : > { %s2292_s13 = smov [#allocation16]  }
  0x80   : > { %s341_s14 = sshll.u32 %s2292_s13, 4  ;;  %s342_s14 = int_to_ptr.vmem [resolvable:$true] %s341_s14 }
  0x81   : > { %s2131_s27 = scalar_lea.vmem %s342_s14, 2048  ;;  %p2139_p11 = scmp.lt.s32.totalorder %s342_s14, %s342_s14 }
  0x82   : > { %p2132_p9 = scmp.ne.s32.totalorder %s342_s14, %s2131_s27  ;;  %p2140_p4 = scmp.lt.s32.totalorder %s2131_s27, %s2131_s27 }
  0x84   : > { %p2134_p0 = pnand %p2132_p9, %p2860_p3  ;;  %p2141_p13 = por %p2140_p4, %p2139_p11 }
  0x86   : > { %p2135_p2 = pneg %p2134_p0 }
  0x88   : > { %p2142_p1 = pnand %p2141_p13, %p2135_p2 }
  0x8a   : > { %2145 = shalt.err (!%p2142_p1)
}
  0x8b   : > { %1835 = dma.hbm_to_vmem [thread:$0]  (!%p2861_p5), %s2819_s8, 2048, %s342_s14, [#allocation15], %s2859_s12, %s2859_s12, %s2858_s7  }
  0x8c   : > { %s2553_s25 = scalar_lea.hbm %s2811_s0, %s2471_s20  ;;  %s359_s19 = scalar_lea.vmem [#allocation2], %s2468_s17 }
  0x8d   : > { %s366_s18 = sshll.u32 %s359_s19, 4  ;;  %s2862_s23 = sand.u32 1, %s2278_s11   ;;  %s2556_s18 = int_to_ptr.vmem [resolvable:$true] %s366_s18 }
  0x8e   : > { %s356_s13 = scalar_lea.sflag [#allocation3], %s2862_s23  ;;  %s2146_s27 = scalar_lea.hbm %s2553_s25, 512 }
  0x8f   : > { %p2147_p3 = scmp.ne.s32.totalorder %s2553_s25, %s2146_s27  ;;  %s2151_s1 = scalar_lea.hbm %s2811_s0, 1024 }
  0x90   : > { %p2152_p5 = scmp.lt.s32.totalorder %s2553_s25, %s2811_s0  ;;  %p2153_p8 = scmp.lt.s32.totalorder %s2151_s1, %s2146_s27 }
  0x91   : > { %p2149_p6 = pnand %p2147_p3, %p2493_p10 }
  0x92   : > { %p2154_p9 = por %p2153_p8, %p2152_p5 }
  0x93   : > { %p2150_p7 = pneg %p2149_p6 }
  0x95   : > { %p2155_p0 = pnand %p2154_p9, %p2150_p7 }
  0x97   : > { %2158 = shalt.err (!%p2155_p0)
}
  0x98   : > { %s2159_s19 = scalar_lea.vmem %s2556_s18, 512  ;;  %s2293_s23 = smov [#allocation2]  }
  0x99   : > { %p2160_p2 = scmp.ne.s32.totalorder %s2556_s18, %s2159_s19  ;;  %s2164_s14 = sshll.u32 %s2293_s23, 4  ;;  %s2165_s14 = int_to_ptr.vmem [resolvable:$false] %s2164_s14 }
  0x9a   : > { %s2166_s3 = scalar_lea.vmem %s2165_s14, 1024  ;;  %p2167_p13 = scmp.lt.s32.totalorder %s2556_s18, %s2165_s14 }
  0x9b   : > { %p2162_p11 = pnand %p2160_p2, %p2493_p10  ;;  %p2168_p1 = scmp.lt.s32.totalorder %s2166_s3, %s2159_s19 }
  0x9d   : > { %p2163_p4 = pneg %p2162_p11  ;;  %p2169_p3 = por %p2168_p1, %p2167_p13 }
  0x9f   : > { %p2170_p6 = pnand %p2169_p3, %p2163_p4 }
  0xa1   : > { %2173 = shalt.err (!%p2170_p6)
}
  0xa2   : > { %1839 = dma.hbm_to_vmem [thread:$0]  (!%p2473_p12), %s2553_s25, 512, %s2556_s18, %s356_s13, %s2859_s12, %s2859_s12, %s2858_s7  }
  0xa3   : > { %s2587_s22 = scalar_lea.hbm %s2813_s2, %s2471_s20  ;;  %s401_s28 = scalar_lea.vmem [#allocation7], %s2468_s17 }
  0xa4   : > { %s408_s19 = sshll.u32 %s401_s28, 4  ;;  %s2174_s23 = scalar_lea.hbm %s2587_s22, 512  ;;  %s409_s19 = int_to_ptr.vmem [resolvable:$true] %s408_s19 }
  0xa5   : > { %p2175_p7 = scmp.ne.s32.totalorder %s2587_s22, %s2174_s23  ;;  %s2179_s25 = scalar_lea.hbm %s2813_s2, 1024 }
  0xa6   : > { %p2180_p9 = scmp.lt.s32.totalorder %s2587_s22, %s2813_s2  ;;  %p2181_p0 = scmp.lt.s32.totalorder %s2179_s25, %s2174_s23 }
  0xa7   : > { %p2177_p5 = pnand %p2175_p7, %p2493_p10 }
  0xa8   : > { %p2182_p2 = por %p2181_p0, %p2180_p9 }
  0xa9   : > { %p2178_p8 = pneg %p2177_p5 }
  0xab   : > { %p2183_p11 = pnand %p2182_p2, %p2178_p8 }
  0xad   : > { %2186 = shalt.err (!%p2183_p11)
}
  0xae   : > { %s2187_s17 = scalar_lea.vmem %s409_s19, 512  ;;  %s2294_s20 = smov [#allocation7]  }
  0xaf   : > { %p2188_p4 = scmp.ne.s32.totalorder %s409_s19, %s2187_s17  ;;  %s2192_s27 = sshll.u32 %s2294_s20, 4  ;;  %s2193_s27 = int_to_ptr.vmem [resolvable:$false] %s2192_s27 }
  0xb0   : > { %s2194_s1 = scalar_lea.vmem %s2193_s27, 1024  ;;  %p2195_p3 = scmp.lt.s32.totalorder %s409_s19, %s2193_s27 }
  0xb1   : > { %p2190_p13 = pnand %p2188_p4, %p2493_p10  ;;  %p2196_p6 = scmp.lt.s32.totalorder %s2194_s1, %s2187_s17 }
  0xb3   : > { %p2191_p1 = pneg %p2190_p13  ;;  %p2197_p7 = por %p2196_p6, %p2195_p3 }
  0xb5   : > { %p2198_p5 = pnand %p2197_p7, %p2191_p1 }
  0xb7   : > { %2201 = shalt.err (!%p2198_p5)
}
  0xb8   : > { %1845 = dma.hbm_to_vmem [thread:$0]  (!%p2473_p12), %s2587_s22, 512, %s409_s19, %s2487_s5, %s2859_s12, %s2859_s12, %s2858_s7  }
  0xb9   : > { %p2863_p10 = scmp.ne.s32.totalorder %s2843_s16, 0 }
  0xba   : > { %s2613_s26 = sand.u32 (!%p2863_p10), 1, %s2274_s10   ;;  %p2864_p8 = scmp.ne.s32.totalorder (!%p2863_p10), %s2851_s21, 0 }
  0xbb   : > { %420 = sbr.rel (%p2863_p10) target bundleno = 1063 (0x427), region = 56  ;;  %s2616_s28 = sshll.u32 (!%p2863_p10), %s2613_s26, 5 }
  0xbc   : > { %s423_s23 = scalar_lea.sflag (!%p2863_p10), [#allocation3], %s2613_s26  ;;  %s426_s24 = scalar_lea.vmem (!%p2863_p10), [#allocation2], %s2616_s28 }
  0xc0   : > { %2245 = dma.done.wait (%p2864_p8), %s423_s23, 512  }
  0xc1   : > { %2247 = vsyncadd (%p2864_p8), %s423_s23, 4294966784  ;;  %s431_s5 = sand.u32 1, %s2369_s15   ;;  %s2626_s7 = scalar_lea.vmem [#allocation5], %s2616_s28 }
  0xc2   : > { %s432_s16 = scalar_lea.sflag [#allocation6], %s431_s5 }
  0xc3   : > { %2249 = dma.done.wait (%p2864_p8), %s432_s16, 1024  }
  0xc4   : > { %2251 = vsyncadd (%p2864_p8), %s432_s16, 4294966272  ;;  %s2633_s12 = scalar_lea.vmem [#allocation7], %s2616_s28  ;;  %p2865_p12 = scmp.eq.s32.totalorder %s2369_s15, 0 }
  0xc6   : > { %2253 = dma.done.wait (%p2865_p12), [#allocation9], 2176   ;;  %p2866_p9 = pmov %p2865_p12 }
  0xc8   : > { %2255 = vsyncadd (%p2866_p9), [#allocation9], 4294965120  ;;  %p2867_p0 = pmov %p2866_p9 }
  0xca   : > { %2257 = dma.done.wait (%p2867_p0), [#allocation12], 4096   ;;  %p2868_p2 = pmov %p2867_p0 }
  0xcb   : > { %p2869_p11 = pmov %p2867_p0 }
  0xcc   : > { %2259 = vsyncadd (%p2868_p2), [#allocation12], 4294963200 }
  0xcd   : > { %2261 = dma.done.wait (%p2869_p11), [#allocation15], 4096   ;;  %p2870_p4 = pmov %p2867_p0 }
  0xce   : > { %v2647_v0 = vld [vmem:[%s426_s24 + $0x18] sm:$0xff]  ;;  %v2649_v1 = vld [vmem:[%s426_s24] sm:$0xff]  ;;  %v2655_v5 = vld [vmem:[%s426_s24 + $0x8] sm:$0xff]  ;;  %s512_s21 = scalar_lea.vmem [#allocation17], %s2616_s28  ;;  %s1462_s19 = sshll.u32 %s2369_s15, 9 }
  0xcf   : > { %2263 = vsyncadd (%p2870_p4), [#allocation15], 4294963200  ;;  %533 = vadd.xlane.f32.xlu1 %v2647_v0  ;;  %527 = vadd.xlane.f32.xlu0 %v2649_v1  ;;  %v535_v2 = vmul.f32 %v2649_v1, %v2649_v1  ;;  %v747_v3 = vld [vmem:[#allocation11 + $0x78] sm:$0xff]  ;;  %v746_v4 = vld [vmem:[#allocation11 + $0x70] sm:$0xff]  ;;  %v536_v7 = vmul.f32 %v2655_v5, %v2655_v5  ;;  %v538_v12 = vmul.f32 %v2647_v0, %v2647_v0  ;;  %s1234_s22 = sshll.u32 %s512_s21, 4  ;;  %s2768_s25 = scalar_lea.hbm %s2820_s9, %s1462_s19  ;;  %s2763_s22 = int_to_ptr.vmem [resolvable:$true] %s1234_s22 }
  0xd0   : > { %1601 = vmatprep.subr.mxu1 %v747_v3  ;;  %v745_v6 = vld [vmem:[#allocation11 + $0x68] sm:$0xff]  ;;  %v728_v9 = vld [vmem:[%s2633_s12] sm:$0xff]  ;;  %v744_v10 = vld [vmem:[#allocation11 + $0x60] sm:$0xff]  ;;  %s1221_s18 = scalar_lea.sflag [#allocation4], %s2613_s26  ;;  %s2202_s13 = scalar_lea.vmem %s2763_s22, 512 }
  0xd1   : > { %1602 = vmatpush3.msra.mxu1 %v747_v3  ;;  %v2660_v8 = vld [vmem:[%s426_s24 + $0x10] sm:$0xff]  ;;  %1633 = vmatprep.mubr.f32.mxu1 %v728_v9  ;;  %v743_v13 = vld [vmem:[#allocation11 + $0x58] sm:$0xff]  ;;  %v742_v14 = vld [vmem:[#allocation11 + $0x50] sm:$0xff]  ;;  %p2203_p13 = scmp.ne.s32.totalorder %s2763_s22, %s2202_s13  ;;  %p2871_p1 = scmp.ne.s32.totalorder %s2852_s29, 0 }
  0xd2   : > { %1603 = vmatprep.subr.mxu1 %v746_v4  ;;  %v537_v11 = vmul.f32 %v2660_v8, %v2660_v8  ;;  %v610_v15 = vld [vmem:[#allocation10 + $0x78] sm:$0xff]  ;;  %v741_v16 = vld [vmem:[#allocation11 + $0x48] sm:$0xff]  ;;  %v609_v17 = vld [vmem:[#allocation10 + $0x70] sm:$0xff]  ;;  %s2295_s15 = smov [#allocation17]  }
  0xd3   : > { %529 = vadd.xlane.f32.xlu0 %v2655_v5  ;;  %539 = vadd.xlane.f32.xlu1 %v535_v2  ;;  %v740_v18 = vld [vmem:[#allocation11 + $0x40] sm:$0xff]  ;;  %v608_v19 = vld [vmem:[#allocation10 + $0x68] sm:$0xff]  ;;  %v739_v20 = vld [vmem:[#allocation11 + $0x38] sm:$0xff]  ;;  %p2204_p3 = pnand %p2203_p13, %p2871_p1  ;;  %s2206_s17 = sshll.u32 %s2295_s15, 4  ;;  %s2207_s17 = int_to_ptr.vmem [resolvable:$false] %s2206_s17 }
  0xd4   : > { %1604 = vmatpush3.msra.mxu1 %v746_v4  ;;  %1563 = vmatprep.subr.mxu0 %v610_v15  ;;  %v607_v21 = vld [vmem:[#allocation10 + $0x60] sm:$0xff]  ;;  %v738_v22 = vld [vmem:[#allocation11 + $0x30] sm:$0xff]  ;;  %v606_v23 = vld [vmem:[#allocation10 + $0x58] sm:$0xff]  ;;  %s2208_s20 = scalar_lea.vmem %s2207_s17, 1024  ;;  %p2209_p7 = scmp.lt.s32.totalorder %s2763_s22, %s2207_s17 }
  0xd5   : > { %1605 = vmatprep.subr.mxu1 %v745_v6  ;;  %1564 = vmatpush3.msra.mxu0 %v610_v15  ;;  %v737_v24 = vld [vmem:[#allocation11 + $0x28] sm:$0xff]  ;;  %v605_v25 = vld [vmem:[#allocation10 + $0x50] sm:$0xff]  ;;  %v736_v26 = vld [vmem:[#allocation11 + $0x20] sm:$0xff]  ;;  %p2205_p6 = pneg %p2204_p3  ;;  %p2210_p5 = scmp.lt.s32.totalorder %s2208_s20, %s2202_s13 }
  0xd6   : > { %1606 = vmatpush3.msra.mxu1 %v745_v6  ;;  %1565 = vmatprep.subr.mxu0 %v609_v17  ;;  %v604_v27 = vld [vmem:[#allocation10 + $0x48] sm:$0xff]  ;;  %v735_v28 = vld [vmem:[#allocation11 + $0x18] sm:$0xff]  ;;  %v603_v29 = vld [vmem:[#allocation10 + $0x40] sm:$0xff] }
  0xd7   : > { %531 = vadd.xlane.f32.xlu0 %v2660_v8  ;;  %541 = vadd.xlane.f32.xlu1 %v536_v7  ;;  %v734_v30 = vld [vmem:[#allocation11 + $0x10] sm:$0xff]  ;;  %v602_v31 = vld [vmem:[#allocation10 + $0x38] sm:$0xff]  ;;  %v733_v32 = vld [vmem:[#allocation11 + $0x8] sm:$0xff]  ;;  %p2211_p10 = por %p2210_p5, %p2209_p7 }
  0xd8   : > { %1607 = vmatprep.subr.mxu1 %v744_v10  ;;  %1566 = vmatpush3.msra.mxu0 %v609_v17  ;;  %v601_v33 = vld [vmem:[#allocation10 + $0x30] sm:$0xff]  ;;  %v600_v34 = vld [vmem:[#allocation10 + $0x28] sm:$0xff]  ;;  %v732_v35 = vld [vmem:[#allocation11] sm:$0xff] }
  0xd9   : > { %1608 = vmatpush3.msra.mxu1 %v744_v10  ;;  %1567 = vmatprep.subr.mxu0 %v608_v19  ;;  %v599_v36 = vld [vmem:[#allocation10 + $0x20] sm:$0xff]  ;;  %v730_v38 = vld [vmem:[%s2633_s12 + $0x10] sm:$0xff]  ;;  %v598_v39 = vld [vmem:[#allocation10 + $0x18] sm:$0xff]  ;;  %p2212_p8 = pnand %p2211_p10, %p2205_p6 }
  0xda   : > { %1609 = vmatprep.subr.mxu1 %v743_v13  ;;  %1568 = vmatpush3.msra.mxu0 %v608_v19  ;;  %v729_v37 = vld [vmem:[%s2633_s12 + $0x8] sm:$0xff]  ;;  %v597_v40 = vld [vmem:[#allocation10 + $0x10] sm:$0xff]  ;;  %v596_v42 = vld [vmem:[#allocation10 + $0x8] sm:$0xff] }
  0xdb   : > { %543 = vadd.xlane.f32.xlu0 %v537_v11  ;;  %545 = vadd.xlane.f32.xlu1 %v538_v12  ;;  %v731_v41 = vld [vmem:[%s2633_s12 + $0x18] sm:$0xff]  ;;  %v595_v43 = vld [vmem:[#allocation10] sm:$0xff]  ;;  %v896_v49 = vld [vmem:[#allocation14 + $0x78] sm:$0xff] }
  0xdc   : > { %1610 = vmatpush3.msra.mxu1 %v743_v13  ;;  %1569 = vmatprep.subr.mxu0 %v607_v21  ;;  %v1436_v15 = vld [vmem:[#allocation8] ss:$0 sm:$0xff]  ;;  %v1437_v17 = vld [vmem:[#allocation8 + $0x1] ss:$0 sm:$0xff] }
  0xdd   : > { %1611 = vmatprep.subr.mxu1 %v742_v14  ;;  %1570 = vmatpush3.msra.mxu0 %v607_v21 }
  0xde   : > { %1612 = vmatpush3.msra.mxu1 %v742_v14  ;;  %1571 = vmatprep.subr.mxu0 %v606_v23 }
  0xdf   : > { %1613 = vmatprep.subr.mxu1 %v741_v16  ;;  %1572 = vmatpush3.msra.mxu0 %v606_v23 }
  0xe0   : > { %1614 = vmatpush3.msra.mxu1 %v741_v16  ;;  %1573 = vmatprep.subr.mxu0 %v605_v25 }
  0xe1   : > { %1615 = vmatprep.subr.mxu1 %v740_v18  ;;  %1574 = vmatpush3.msra.mxu0 %v605_v25 }
  0xe2   : > { %1616 = vmatpush3.msra.mxu1 %v740_v18  ;;  %1575 = vmatprep.subr.mxu0 %v604_v27 }
  0xe3   : > { %1617 = vmatprep.subr.mxu1 %v739_v20  ;;  %1576 = vmatpush3.msra.mxu0 %v604_v27 }
  0xe4   : > { %1618 = vmatpush3.msra.mxu1 %v739_v20  ;;  %1577 = vmatprep.subr.mxu0 %v603_v29 }
  0xe5   : > { %1619 = vmatprep.subr.mxu1 %v738_v22  ;;  %1578 = vmatpush3.msra.mxu0 %v603_v29 }
  0xe6   : > { %1620 = vmatpush3.msra.mxu1 %v738_v22  ;;  %1579 = vmatprep.subr.mxu0 %v602_v31 }
  0xe7   : > { %1621 = vmatprep.subr.mxu1 %v737_v24  ;;  %1580 = vmatpush3.msra.mxu0 %v602_v31 }
  0xe8   : > { %1622 = vmatpush3.msra.mxu1 %v737_v24  ;;  %1581 = vmatprep.subr.mxu0 %v601_v33 }
  0xe9   : > { %1623 = vmatprep.subr.mxu1 %v736_v26  ;;  %1582 = vmatpush3.msra.mxu0 %v601_v33 }
  0xea   : > { %1624 = vmatpush3.msra.mxu1 %v736_v26  ;;  %1583 = vmatprep.subr.mxu0 %v600_v34 }
  0xeb   : > { %1625 = vmatprep.subr.mxu1 %v735_v28  ;;  %1584 = vmatpush3.msra.mxu0 %v600_v34 }
  0xec   : > { %1626 = vmatpush3.msra.mxu1 %v735_v28  ;;  %1585 = vmatprep.subr.mxu0 %v599_v36 }
  0xed   : > { %1627 = vmatprep.subr.mxu1 %v734_v30  ;;  %1586 = vmatpush3.msra.mxu0 %v599_v36  ;;  %v890_v36 = vld [vmem:[#allocation14 + $0x48] sm:$0xff] }
  0xee   : > { %1628 = vmatpush3.msra.mxu1 %v734_v30  ;;  %1587 = vmatprep.subr.mxu0 %v598_v39  ;;  %v895_v30 = vld [vmem:[#allocation14 + $0x70] sm:$0xff] }
  0xef   : > { %1629 = vmatprep.subr.mxu1 %v733_v32  ;;  %1588 = vmatpush3.msra.mxu0 %v598_v39  ;;  %v887_v39 = vld [vmem:[#allocation14 + $0x30] sm:$0xff] }
  0xf0   : > { %1630 = vmatpush3.msra.mxu1 %v733_v32  ;;  %1589 = vmatprep.subr.mxu0 %v597_v40 }
  0xf1   : > { %1631 = vmatprep.subr.mxu1 %v732_v35  ;;  %1590 = vmatpush3.msra.mxu0 %v597_v40  ;;  %v886_v40 = vld [vmem:[#allocation14 + $0x28] sm:$0xff] }
  0xf2   : > { %1632 = vmatpush3.msra.mxu1 %v732_v35  ;;  %1591 = vmatprep.subr.mxu0 %v596_v42  ;;  %v891_v35 = vld [vmem:[#allocation14 + $0x50] sm:$0xff] }
  0xf3   : > { %1634 = vmatmul.mubr.f32.vlgmr.msra.gmra.mxu1 %v729_v37  ;;  %1592 = vmatpush3.msra.mxu0 %v596_v42  ;;  %v889_v37 = vld [vmem:[#allocation14 + $0x40] sm:$0xff]  ;;  %v884_v42 = vld [vmem:[#allocation14 + $0x18] sm:$0xff] }
  0xf4   : > { %1636 = vmatprep.mubr.f32.mxu1 %v730_v38  ;;  %1593 = vmatprep.subr.mxu0 %v595_v43  ;;  %v888_v38 = vld [vmem:[#allocation14 + $0x38] sm:$0xff] }
  0xf5   : > { %1594 = vmatpush3.msra.mxu0 %v595_v43  ;;  %v883_v43 = vld [vmem:[#allocation14 + $0x10] sm:$0xff] }
  0xf6   : > { %1639 = vmatprep.subr.mxu0 %v896_v49 }
  0xf7   : > { %1637 = vmatmul.mubr.f32.gmra.mxu1 %v731_v41  ;;  %v885_v41 = vld [vmem:[#allocation14 + $0x20] sm:$0xff] }
 0x158   : > { %v534_v44 = vpop.xlane.xlu1 %533  ;;  %v528_v45 = vpop.xlane.xlu0 %527 }
 0x159   : > { %v547_v46 = vmul.f32 0.010416667, %v528_v45  ;;  %v550_v54 = vmul.f32 0.010416667, %v534_v44  ;;  %v1443_v44 = vld [vmem:[#allocation8 + $0x3] ss:$0 sm:$0xff] }
 0x15b   : > { %v555_v50 = vmul.f32 %v547_v46, %v547_v46  ;;  %v558_v62 = vmul.f32 %v550_v54, %v550_v54  ;;  %v571_v13 = vsub.f32 %v2649_v1, %v547_v46  ;;  %v574_v26 = vsub.f32 %v2647_v0, %v550_v54  ;;  %v892_v0 = vld [vmem:[#allocation14 + $0x58] sm:$0xff] }
 0x15c   : > { %v530_v47 = vpop.xlane.xlu0 %529  ;;  %v540_v48 = vpop.xlane.xlu1 %539 }
 0x15d   : > { %v548_v51 = vmul.f32 0.010416667, %v530_v47  ;;  %v551_v52 = vmul.f32 0.010416667, %v540_v48 }
 0x15f   : > { %v559_v53 = vsub.f32 %v551_v52, %v555_v50  ;;  %v556_v57 = vmul.f32 %v548_v51, %v548_v51  ;;  %v572_v18 = vsub.f32 %v2655_v5, %v548_v51  ;;  %v894_v5 = vld [vmem:[#allocation14 + $0x68] sm:$0xff] }
 0x160   : > { %v532_v55 = vpop.xlane.xlu0 %531  ;;  %v542_v56 = vpop.xlane.xlu1 %541 }
 0x161   : > { %v563_v58 = vadd.f32 1e-05, %v559_v53  ;;  %v549_v59 = vmul.f32 0.010416667, %v532_v55  ;;  %v552_v60 = vmul.f32 0.010416667, %v542_v56 }
 0x162   : > { %v882_v56 = vld [vmem:[#allocation14 + $0x8] sm:$0xff] }
 0x163   : > { %1906 = vrsqrt.f32 %v563_v58  ;;  %v560_v61 = vsub.f32 %v552_v60, %v556_v57  ;;  %v557_v3 = vmul.f32 %v549_v59, %v549_v59  ;;  %v573_v23 = vsub.f32 %v2660_v8, %v549_v59  ;;  %v893_v8 = vld [vmem:[#allocation14 + $0x60] sm:$0xff]  ;;  %v880_v59 = vld [vmem:[#allocation13 + $0x78] sm:$0xff] }
 0x164   : > { %v544_v63 = vpop.xlane.xlu0 %543  ;;  %v546_v2 = vpop.xlane.xlu1 %545  ;;  %v881_v58 = vld [vmem:[#allocation14] sm:$0xff]  ;;  %1677 = vmatprep.subr.mxu1 %v880_v59 }
 0x165   : > { %v564_v4 = vadd.f32 1e-05, %v560_v61  ;;  %v553_v6 = vmul.f32 0.010416667, %v544_v63  ;;  %v554_v7 = vmul.f32 0.010416667, %v546_v2  ;;  %1678 = vmatpush3.msra.mxu1 %v880_v59 }
 0x166   : > { %v879_v61 = vld [vmem:[#allocation13 + $0x70] sm:$0xff]  ;;  %v878_v2 = vld [vmem:[#allocation13 + $0x68] sm:$0xff] }
 0x167   : > { %1908 = vrsqrt.f32 %v564_v4  ;;  %v561_v9 = vsub.f32 %v553_v6, %v557_v3  ;;  %v562_v10 = vsub.f32 %v554_v7, %v558_v62  ;;  %1679 = vmatprep.subr.mxu1 %v879_v61  ;;  %v877_v6 = vld [vmem:[#allocation13 + $0x60] sm:$0xff] }
 0x168   : > { %1680 = vmatpush3.msra.mxu1 %v879_v61 }
 0x169   : > { %v565_v11 = vadd.f32 1e-05, %v561_v9  ;;  %v566_v12 = vadd.f32 1e-05, %v562_v10  ;;  %1681 = vmatprep.subr.mxu1 %v878_v2  ;;  %v876_v10 = vld [vmem:[#allocation13 + $0x58] sm:$0xff] }
 0x16a   : > { %1682 = vmatpush3.msra.mxu1 %v878_v2 }
 0x16b   : > { %1910 = vrsqrt.f32 %v565_v11  ;;  %1683 = vmatprep.subr.mxu1 %v877_v6 }
 0x16c   : > { %1912 = vrsqrt.f32 %v566_v12  ;;  %1684 = vmatpush3.msra.mxu1 %v877_v6  ;;  %v875_v12 = vld [vmem:[#allocation13 + $0x50] sm:$0xff]  ;;  %v1087_v6 = vld [vmem:[#allocation16 + $0x20] sm:$0xff] }
 0x16d   : > { %1685 = vmatprep.subr.mxu1 %v876_v10 }
 0x16e   : > { %1686 = vmatpush3.msra.mxu1 %v876_v10  ;;  %v1084_v10 = vld [vmem:[#allocation16 + $0x8] sm:$0xff] }
 0x16f   : > { %1687 = vmatprep.subr.mxu1 %v875_v12 }
 0x170   : > { %v1907_v14 = vpop.eup %1906  ;;  %1688 = vmatpush3.msra.mxu1 %v875_v12 }
 0x171   : > { %v575_v16 = vmul.f32 %v1907_v14, %v571_v13  ;;  %v874_v13 = vld [vmem:[#allocation13 + $0x48] sm:$0xff]  ;;  %v873_v14 = vld [vmem:[#allocation13 + $0x40] sm:$0xff] }
 0x172   : > { %1689 = vmatprep.subr.mxu1 %v874_v13 }
 0x173   : > { %v583_v19 = vmul.f32 %v1436_v15, %v575_v16  ;;  %1690 = vmatpush3.msra.mxu1 %v874_v13 }
 0x174   : > { %v1909_v20 = vpop.eup %1908  ;;  %1691 = vmatprep.subr.mxu1 %v873_v14 }
 0x175   : > { %v591_v21 = vadd.f32 %v1437_v17, %v583_v19  ;;  %v576_v22 = vmul.f32 %v1909_v20, %v572_v18  ;;  %1692 = vmatpush3.msra.mxu1 %v873_v14  ;;  %v870_v20 = vld [vmem:[#allocation13 + $0x28] sm:$0xff] }
 0x177   : > { %1595 = vmatprep.mubr.f32.mxu0 %v591_v21  ;;  %v584_v24 = vmul.f32 %v1436_v15, %v576_v22 }
 0x178   : > { %v1911_v25 = vpop.eup %1910 }
 0x179   : > { %v1913_v27 = vpop.eup %1912  ;;  %v592_v28 = vadd.f32 %v1437_v17, %v584_v24  ;;  %v577_v1 = vmul.f32 %v1911_v25, %v573_v23  ;;  %v869_v23 = vld [vmem:[#allocation13 + $0x20] sm:$0xff] }
 0x17a   : > { %v578_v29 = vmul.f32 %v1913_v27, %v574_v26  ;;  %v868_v26 = vld [vmem:[#allocation13 + $0x18] sm:$0xff] }
 0x17b   : > { %1596 = vmatmul.mubr.f32.vlgmr.msra.gmra.mxu0 %v592_v28  ;;  %v585_v31 = vmul.f32 %v1436_v15, %v577_v1  ;;  %v867_v28 = vld [vmem:[#allocation13 + $0x10] sm:$0xff]  ;;  %v866_v1 = vld [vmem:[#allocation13 + $0x8] sm:$0xff] }
 0x17c   : > { %v586_v32 = vmul.f32 %v1436_v15, %v578_v29  ;;  %1640 = vmatpush3.msra.mxu0 %v896_v49  ;;  %v872_v15 = vld [vmem:[#allocation13 + $0x38] sm:$0xff]  ;;  %v865_v29 = vld [vmem:[#allocation13] sm:$0xff] }
 0x17d   : > { %v593_v33 = vadd.f32 %v1437_v17, %v585_v31  ;;  %1641 = vmatprep.subr.mxu0 %v895_v30  ;;  %1693 = vmatprep.subr.mxu1 %v872_v15  ;;  %v2693_v31 = vld [vmem:[#allocation16 + $0x70] sm:$0xff] }
 0x17e   : > { %v594_v34 = vadd.f32 %v1437_v17, %v586_v32  ;;  %1642 = vmatpush3.msra.mxu0 %v895_v30  ;;  %1694 = vmatpush3.msra.mxu1 %v872_v15  ;;  %v871_v17 = vld [vmem:[#allocation13 + $0x30] sm:$0xff]  ;;  %v2691_v30 = vld [vmem:[#allocation16 + $0x78] sm:$0xff]  ;;  %v2698_v32 = vld [vmem:[#allocation16 + $0x68] sm:$0xff] }
 0x17f   : > { %1598 = vmatprep.mubr.f32.mxu0 %v593_v33  ;;  %1643 = vmatprep.subr.mxu0 %v894_v5  ;;  %v2706_v33 = vld [vmem:[#allocation16 + $0x58] sm:$0xff] }
 0x180   : > { %1599 = vmatmul.mubr.f32.gmra.mxu0 %v594_v34  ;;  %1695 = vmatprep.subr.mxu1 %v871_v17  ;;  %v2710_v34 = vld [vmem:[#allocation16 + $0x50] sm:$0xff]  ;;  %v1448_v15 = vld [vmem:[#allocation8 + $0x4] ss:$0 sm:$0xff] }
 0x181   : > { %1644 = vmatpush3.msra.mxu0 %v894_v5  ;;  %1696 = vmatpush3.msra.mxu1 %v871_v17  ;;  %v2702_v5 = vld [vmem:[#allocation16 + $0x60] sm:$0xff] }
 0x182   : > { %1645 = vmatprep.subr.mxu0 %v893_v8  ;;  %1697 = vmatprep.subr.mxu1 %v870_v20 }
 0x183   : > { %1646 = vmatpush3.msra.mxu0 %v893_v8  ;;  %1698 = vmatpush3.msra.mxu1 %v870_v20  ;;  %v2714_v8 = vld [vmem:[#allocation16 + $0x48] sm:$0xff] }
 0x184   : > { %1647 = vmatprep.subr.mxu0 %v892_v0  ;;  %1699 = vmatprep.subr.mxu1 %v869_v23 }
 0x185   : > { %1648 = vmatpush3.msra.mxu0 %v892_v0  ;;  %1700 = vmatpush3.msra.mxu1 %v869_v23  ;;  %v2718_v0 = vld [vmem:[#allocation16 + $0x40] sm:$0xff] }
 0x186   : > { %1649 = vmatprep.subr.mxu0 %v891_v35  ;;  %1701 = vmatprep.subr.mxu1 %v868_v26 }
 0x187   : > { %1650 = vmatpush3.msra.mxu0 %v891_v35  ;;  %1702 = vmatpush3.msra.mxu1 %v868_v26  ;;  %v2722_v35 = vld [vmem:[#allocation16 + $0x38] sm:$0xff] }
 0x188   : > { %1651 = vmatprep.subr.mxu0 %v890_v36  ;;  %1703 = vmatprep.subr.mxu1 %v867_v28 }
 0x189   : > { %1652 = vmatpush3.msra.mxu0 %v890_v36  ;;  %1704 = vmatpush3.msra.mxu1 %v867_v28  ;;  %v2726_v36 = vld [vmem:[#allocation16 + $0x30] sm:$0xff] }
 0x18a   : > { %1653 = vmatprep.subr.mxu0 %v889_v37  ;;  %1705 = vmatprep.subr.mxu1 %v866_v1 }
 0x18b   : > { %1654 = vmatpush3.msra.mxu0 %v889_v37  ;;  %1706 = vmatpush3.msra.mxu1 %v866_v1  ;;  %v2730_v37 = vld [vmem:[#allocation16 + $0x28] sm:$0xff] }
 0x18c   : > { %1655 = vmatprep.subr.mxu0 %v888_v38  ;;  %1707 = vmatprep.subr.mxu1 %v865_v29 }
 0x18d   : > { %1656 = vmatpush3.msra.mxu0 %v888_v38  ;;  %1708 = vmatpush3.msra.mxu1 %v865_v29  ;;  %v1438_v38 = vld [vmem:[#allocation8 + $0x2] ss:$0 sm:$0xff] }
 0x18e   : > { %1657 = vmatprep.subr.mxu0 %v887_v39  ;;  %1753 = vmatprep.subr.mxu1 %v2691_v30 }
 0x18f   : > { %1658 = vmatpush3.msra.mxu0 %v887_v39 }
 0x190   : > { %1659 = vmatprep.subr.mxu0 %v886_v40 }
 0x191   : > { %1660 = vmatpush3.msra.mxu0 %v886_v40 }
 0x192   : > { %1661 = vmatprep.subr.mxu0 %v885_v41 }
 0x193   : > { %1662 = vmatpush3.msra.mxu0 %v885_v41 }
 0x194   : > { %1663 = vmatprep.subr.mxu0 %v884_v42 }
 0x195   : > { %1664 = vmatpush3.msra.mxu0 %v884_v42 }
 0x196   : > { %1665 = vmatprep.subr.mxu0 %v883_v43 }
 0x197   : > { %1666 = vmatpush3.msra.mxu0 %v883_v43 }
 0x198   : > { %1667 = vmatprep.subr.mxu0 %v882_v56 }
 0x199   : > { %1668 = vmatpush3.msra.mxu0 %v882_v56 }
 0x19a   : > { %1669 = vmatprep.subr.mxu0 %v881_v58 }
 0x19b   : > { %1670 = vmatpush3.msra.mxu0 %v881_v58 }
 0x19c   : > { %1715 = vmatprep.subr.mxu0 %v2691_v30 }
 0x1b3   : > { %v1635_v45 = vpop.f32.mrf.mxu1 }
 0x1b4   : > { %v2675_v46 = vadd.f32 %v1635_v45, %v1443_v44 }
 0x1b5   : > { %v818_v47 = vpop.f32.mrf.mxu1 }
 0x1b6   : > { %v1445_v48 = vmul.f32 -1.442695, %v2675_v46  ;;  %v2678_v49 = vadd.f32 %v1443_v44, %v818_v47 }
 0x1b7   : > { %v1638_v50 = vpop.f32.mrf.mxu1 }
 0x1b8   : > { %1914 = vpow2.f32 %v1445_v48  ;;  %v1444_v51 = vmul.f32 -1.442695, %v2678_v49  ;;  %v2681_v52 = vadd.f32 %v1638_v50, %v1443_v44 }
 0x1b9   : > { %v828_v53 = vpop.f32.mrf.mxu1 }
 0x1ba   : > { %1916 = vpow2.f32 %v1444_v51  ;;  %v1447_v54 = vmul.f32 -1.442695, %v2681_v52  ;;  %v2684_v55 = vadd.f32 %v1443_v44, %v828_v53 }
 0x1bc   : > { %1918 = vpow2.f32 %v1447_v54  ;;  %v1446_v57 = vmul.f32 -1.442695, %v2684_v55 }
 0x1be   : > { %1920 = vpow2.f32 %v1446_v57 }
 0x1c5   : > { %v1915_v60 = vpop.eup %1914 }
 0x1c6   : > { %v850_v62 = vadd.f32 1.0, %v1915_v60 }
 0x1c7   : > { %v1917_v63 = vpop.eup %1916 }
 0x1c8   : > { %1922 = vrcp.f32 %v850_v62  ;;  %v849_v3 = vadd.f32 1.0, %v1917_v63 }
 0x1c9   : > { %v1919_v4 = vpop.eup %1918 }
 0x1ca   : > { %1924 = vrcp.f32 %v849_v3  ;;  %v852_v7 = vadd.f32 1.0, %v1919_v4 }
 0x1cb   : > { %v1921_v9 = vpop.eup %1920 }
 0x1cc   : > { %1926 = vrcp.f32 %v852_v7  ;;  %v851_v11 = vadd.f32 1.0, %v1921_v9  ;;  %v1086_v7 = vld [vmem:[#allocation16 + $0x18] sm:$0xff]  ;;  %v1085_v9 = vld [vmem:[#allocation16 + $0x10] sm:$0xff] }
 0x1ce   : > { %1928 = vrcp.f32 %v851_v11  ;;  %v1083_v11 = vld [vmem:[#allocation16] sm:$0xff] }
 0x1d5   : > { %v1923_v16 = vpop.eup %1922 }
 0x1d6   : > { %v862_v19 = vmul.f32 %v1923_v16, %v2675_v46 }
 0x1d7   : > { %v1925_v18 = vpop.eup %1924 }
 0x1d8   : > { %v861_v21 = vmul.f32 %v1925_v18, %v2678_v49 }
 0x1d9   : > { %v1927_v22 = vpop.eup %1926 }
 0x1da   : > { %1671 = vmatprep.mubr.f32.mxu0 %v861_v21  ;;  %v864_v25 = vmul.f32 %v1927_v22, %v2681_v52  ;;  %v1075_v21 = vld [vmem:[%s2626_s7] sm:$0xff]  ;;  %v1076_v22 = vld [vmem:[%s2626_s7 + $0x8] sm:$0xff] }
 0x1db   : > { %v1929_v24 = vpop.eup %1928  ;;  %1672 = vmatmul.mubr.f32.vlgmr.msra.gmra.mxu0 %v862_v19 }
 0x1dc   : > { %v863_v27 = vmul.f32 %v1929_v24, %v2684_v55  ;;  %1716 = vmatpush3.msra.mxu0 %v2691_v30 }
 0x1dd   : > { %1717 = vmatprep.subr.mxu0 %v2693_v31 }
 0x1de   : > { %1674 = vmatprep.mubr.f32.mxu0 %v863_v27  ;;  %1718 = vmatpush3.msra.mxu0 %v2693_v31 }
 0x1df   : > { %1675 = vmatmul.mubr.f32.gmra.mxu0 %v864_v25  ;;  %1719 = vmatprep.subr.mxu0 %v2698_v32 }
 0x1e0   : > { %1720 = vmatpush3.msra.mxu0 %v2698_v32 }
 0x1e1   : > { %1721 = vmatprep.subr.mxu0 %v2702_v5 }
 0x1e2   : > { %1722 = vmatpush3.msra.mxu0 %v2702_v5 }
 0x1e3   : > { %1723 = vmatprep.subr.mxu0 %v2706_v33 }
 0x1e4   : > { %1724 = vmatpush3.msra.mxu0 %v2706_v33 }
 0x1e5   : > { %1725 = vmatprep.subr.mxu0 %v2710_v34 }
 0x1e6   : > { %1726 = vmatpush3.msra.mxu0 %v2710_v34 }
 0x1e7   : > { %1727 = vmatprep.subr.mxu0 %v2714_v8 }
 0x1e8   : > { %1728 = vmatpush3.msra.mxu0 %v2714_v8 }
 0x1e9   : > { %1729 = vmatprep.subr.mxu0 %v2718_v0 }
 0x1ea   : > { %1730 = vmatpush3.msra.mxu0 %v2718_v0 }
 0x1eb   : > { %1731 = vmatprep.subr.mxu0 %v2722_v35 }
 0x1ec   : > { %1732 = vmatpush3.msra.mxu0 %v2722_v35 }
 0x1ed   : > { %1733 = vmatprep.subr.mxu0 %v2726_v36 }
 0x1ee   : > { %1734 = vmatpush3.msra.mxu0 %v2726_v36 }
 0x1ef   : > { %1735 = vmatprep.subr.mxu0 %v2730_v37 }
 0x1f0   : > { %1736 = vmatpush3.msra.mxu0 %v2730_v37 }
 0x1f1   : > { %1737 = vmatprep.subr.mxu0 %v1087_v6 }
 0x1f2   : > { %1738 = vmatpush3.msra.mxu0 %v1087_v6 }
 0x1f3   : > { %1739 = vmatprep.subr.mxu0 %v1086_v7 }
 0x1f4   : > { %1740 = vmatpush3.msra.mxu0 %v1086_v7 }
 0x1f5   : > { %1741 = vmatprep.subr.mxu0 %v1085_v9 }
 0x1f6   : > { %1742 = vmatpush3.msra.mxu0 %v1085_v9 }
 0x1f7   : > { %1743 = vmatprep.subr.mxu0 %v1084_v10 }
 0x1f8   : > { %1744 = vmatpush3.msra.mxu0 %v1084_v10 }
 0x1f9   : > { %1745 = vmatprep.subr.mxu0 %v1083_v11 }
 0x1fa   : > { %1746 = vmatpush3.msra.mxu0 %v1083_v11 }
 0x23b   : > { %v1597_v39 = vpop.f32.mrf.mxu0 }
 0x23c   : > { %v687_v40 = vadd.f32 %v1597_v39, %v1438_v38 }
 0x23d   : > { %v681_v41 = vpop.f32.mrf.mxu0 }
 0x23e   : > { %v1440_v42 = vmul.f32 -1.442695, %v687_v40  ;;  %v682_v43 = vadd.f32 %v1438_v38, %v681_v41 }
 0x240   : > { %1930 = vpow2.f32 %v1440_v42  ;;  %v1439_v44 = vmul.f32 -1.442695, %v682_v43  ;;  %v1600_v45 = vpop.f32.mrf.mxu0 }
 0x241   : > { %v697_v46 = vadd.f32 %v1600_v45, %v1438_v38 }
 0x242   : > { %1932 = vpow2.f32 %v1439_v44  ;;  %v691_v47 = vpop.f32.mrf.mxu0 }
 0x243   : > { %v1442_v48 = vmul.f32 -1.442695, %v697_v46  ;;  %v692_v49 = vadd.f32 %v1438_v38, %v691_v47 }
 0x245   : > { %1934 = vpow2.f32 %v1442_v48  ;;  %v1441_v50 = vmul.f32 -1.442695, %v692_v49 }
 0x247   : > { %1936 = vpow2.f32 %v1441_v50 }
 0x24d   : > { %v1931_v51 = vpop.eup %1930 }
 0x24e   : > { %v713_v52 = vadd.f32 1.0, %v1931_v51 }
 0x24f   : > { %v1933_v53 = vpop.eup %1932 }
 0x250   : > { %v712_v54 = vadd.f32 1.0, %v1933_v53  ;;  %1938 = vrcp.f32 %v713_v52 }
 0x252   : > { %v1935_v55 = vpop.eup %1934  ;;  %1940 = vrcp.f32 %v712_v54 }
 0x253   : > { %v715_v56 = vadd.f32 1.0, %v1935_v55 }
 0x254   : > { %v1937_v57 = vpop.eup %1936 }
 0x255   : > { %v714_v58 = vadd.f32 1.0, %v1937_v57  ;;  %1942 = vrcp.f32 %v715_v56 }
 0x257   : > { %1944 = vrcp.f32 %v714_v58 }
 0x25d   : > { %v1939_v59 = vpop.eup %1938 }
 0x25e   : > { %v725_v62 = vmul.f32 %v1939_v59, %v687_v40 }
 0x25f   : > { %v1941_v60 = vpop.eup %1940 }
 0x260   : > { %v724_v61 = vmul.f32 %v1941_v60, %v682_v43 }
 0x262   : > { %1709 = vmatprep.mubr.f32.mxu1 %v724_v61  ;;  %v1943_v63 = vpop.eup %1942 }
 0x263   : > { %1710 = vmatmul.mubr.f32.vlgmr.msra.gmra.mxu1 %v725_v62  ;;  %v727_v4 = vmul.f32 %v1943_v63, %v697_v46 }
 0x264   : > { %v1945_v2 = vpop.eup %1944  ;;  %1769 = vmatpush3.msra.mxu1 %v2691_v30 }
 0x265   : > { %v726_v3 = vmul.f32 %v1945_v2, %v692_v49  ;;  %1754 = vmatprep.subr.mxu1 %v2693_v31 }
 0x266   : > { %1770 = vmatpush3.msra.mxu1 %v2693_v31  ;;  %v1077_v31 = vld [vmem:[%s2626_s7 + $0x10] sm:$0xff] }
 0x267   : > { %1712 = vmatprep.mubr.f32.mxu1 %v726_v3  ;;  %1755 = vmatprep.subr.mxu1 %v2698_v32 }
 0x268   : > { %1713 = vmatmul.mubr.f32.gmra.mxu1 %v727_v4 }
 0x269   : > { %1771 = vmatpush3.msra.mxu1 %v2698_v32  ;;  %v1078_v32 = vld [vmem:[%s2626_s7 + $0x18] sm:$0xff] }
 0x26a   : > { %1756 = vmatprep.subr.mxu1 %v2702_v5 }
 0x26b   : > { %1772 = vmatpush3.msra.mxu1 %v2702_v5 }
 0x26c   : > { %1757 = vmatprep.subr.mxu1 %v2706_v33 }
 0x26d   : > { %1773 = vmatpush3.msra.mxu1 %v2706_v33 }
 0x26e   : > { %1758 = vmatprep.subr.mxu1 %v2710_v34 }
 0x26f   : > { %1774 = vmatpush3.msra.mxu1 %v2710_v34 }
 0x270   : > { %1759 = vmatprep.subr.mxu1 %v2714_v8 }
 0x271   : > { %1775 = vmatpush3.msra.mxu1 %v2714_v8  ;;  %v1449_v8 = vld [vmem:[#allocation8 + $0x5] ss:$0 sm:$0xff] }
 0x272   : > { %1760 = vmatprep.subr.mxu1 %v2718_v0 }
 0x273   : > { %1776 = vmatpush3.msra.mxu1 %v2718_v0 }
 0x274   : > { %1761 = vmatprep.subr.mxu1 %v2722_v35 }
 0x275   : > { %1777 = vmatpush3.msra.mxu1 %v2722_v35 }
 0x276   : > { %1762 = vmatprep.subr.mxu1 %v2726_v36 }
 0x277   : > { %1778 = vmatpush3.msra.mxu1 %v2726_v36 }
 0x278   : > { %1763 = vmatprep.subr.mxu1 %v2730_v37 }
 0x279   : > { %1779 = vmatpush3.msra.mxu1 %v2730_v37 }
 0x27a   : > { %1764 = vmatprep.subr.mxu1 %v1087_v6 }
 0x27b   : > { %1780 = vmatpush3.msra.mxu1 %v1087_v6 }
 0x27c   : > { %1765 = vmatprep.subr.mxu1 %v1086_v7 }
 0x27d   : > { %1781 = vmatpush3.msra.mxu1 %v1086_v7 }
 0x27e   : > { %1766 = vmatprep.subr.mxu1 %v1085_v9 }
 0x27f   : > { %1782 = vmatpush3.msra.mxu1 %v1085_v9 }
 0x280   : > { %1767 = vmatprep.subr.mxu1 %v1084_v10 }
 0x281   : > { %1783 = vmatpush3.msra.mxu1 %v1084_v10 }
 0x282   : > { %1768 = vmatprep.subr.mxu1 %v1083_v11 }
 0x283   : > { %1784 = vmatpush3.msra.mxu1 %v1083_v11 }
 0x29b   : > { %v1673_v12 = vpop.f32.mrf.mxu0 }
 0x29d   : > { %v963_v13 = vpop.f32.mrf.mxu0 }
 0x29f   : > { %v1676_v18 = vpop.f32.mrf.mxu0 }
 0x2a1   : > { %v973_v26 = vpop.f32.mrf.mxu0 }
 0x323   : > { %v1711_v14 = vpop.f32.mrf.mxu1 }
 0x324   : > { %v1054_v16 = vadd.f32 %v1711_v14, %v1673_v12 }
 0x325   : > { %v1048_v17 = vpop.f32.mrf.mxu1 }
 0x326   : > { %v1049_v19 = vadd.f32 %v1048_v17, %v963_v13  ;;  %v1072_v20 = vadd.f32 %v1448_v15, %v1054_v16 }
 0x328   : > { %v1071_v23 = vadd.f32 %v1448_v15, %v1049_v19  ;;  %v1714_v24 = vpop.f32.mrf.mxu1  ;;  %v1080_v1 = vadd.f32 %v1076_v22, %v1072_v20 }
 0x329   : > { %v1064_v25 = vadd.f32 %v1714_v24, %v1676_v18 }
 0x32a   : > { %v1058_v27 = vpop.f32.mrf.mxu1  ;;  %v1079_v28 = vadd.f32 %v1075_v21, %v1071_v23 }
 0x32b   : > { %v1059_v29 = vadd.f32 %v1058_v27, %v973_v26  ;;  %v1074_v30 = vadd.f32 %v1448_v15, %v1064_v25 }
 0x32c   : > { %1747 = vmatprep.mubr.f32.mxu0 %v1079_v28 }
 0x32d   : > { %v1073_v5 = vadd.f32 %v1448_v15, %v1059_v29  ;;  %1748 = vmatmul.mubr.f32.vlgmr.msra.gmra.mxu0 %v1080_v1  ;;  %v1082_v34 = vadd.f32 %v1078_v32, %v1074_v30 }
 0x32f   : > { %v1081_v33 = vadd.f32 %v1077_v31, %v1073_v5 }
 0x331   : > { %1750 = vmatprep.mubr.f32.mxu1 %v1081_v33 }
 0x332   : > { %1751 = vmatmul.mubr.f32.vlgmr.msra.gmra.mxu1 %v1082_v34 }
 0x3ed   : > { %v1749_v0 = vpop.f32.mrf.mxu0 }
 0x3ee   : > { %v1175_v35 = vadd.f32 %v1749_v0, %v1449_v8 }
 0x3ef   : > { %v1169_v36 = vpop.f32.mrf.mxu0 }
 0x3f0   : > { %v1451_v37 = vmul.f32 -1.442695, %v1175_v35  ;;  %v1170_v38 = vadd.f32 %v1449_v8, %v1169_v36 }
 0x3f2   : > { %1946 = vpow2.f32 %v1451_v37  ;;  %v1450_v39 = vmul.f32 -1.442695, %v1170_v38  ;;  %v1752_v40 = vpop.f32.mrf.mxu1 }
 0x3f3   : > { %v1185_v41 = vadd.f32 %v1752_v40, %v1449_v8 }
 0x3f4   : > { %1948 = vpow2.f32 %v1450_v39  ;;  %v1179_v42 = vpop.f32.mrf.mxu1 }
 0x3f5   : > { %v1453_v43 = vmul.f32 -1.442695, %v1185_v41  ;;  %v1180_v44 = vadd.f32 %v1449_v8, %v1179_v42 }
 0x3f7   : > { %1950 = vpow2.f32 %v1453_v43  ;;  %v1452_v45 = vmul.f32 -1.442695, %v1180_v44 }
 0x3f9   : > { %1952 = vpow2.f32 %v1452_v45 }
 0x3ff   : > { %v1947_v46 = vpop.eup %1946 }
 0x400   : > { %v1201_v47 = vadd.f32 1.0, %v1947_v46 }
 0x401   : > { %v1949_v48 = vpop.eup %1948 }
 0x402   : > { %1954 = vrcp.f32 %v1201_v47  ;;  %v1200_v49 = vadd.f32 1.0, %v1949_v48 }
 0x404   : > { %v1951_v50 = vpop.eup %1950  ;;  %1956 = vrcp.f32 %v1200_v49 }
 0x405   : > { %v1203_v51 = vadd.f32 1.0, %v1951_v50 }
 0x406   : > { %v1953_v52 = vpop.eup %1952 }
 0x407   : > { %1958 = vrcp.f32 %v1203_v51  ;;  %v1202_v53 = vadd.f32 1.0, %v1953_v52 }
 0x409   : > { %1960 = vrcp.f32 %v1202_v53 }
 0x40f   : > { %v1955_v54 = vpop.eup %1954 }
 0x410   : > { %v1213_v55 = vmul.f32 %v1955_v54, %v1175_v35 }
 0x411   : > { %v1957_v56 = vpop.eup %1956 }
 0x412   : > { %1217 = vst [vmem:[%s512_s21 + $0x8] sm:$0xff] %v1213_v55  ;;  %v1212_v57 = vmul.f32 %v1957_v56, %v1170_v38 }
 0x414   : > { %v1959_v58 = vpop.eup %1958  ;;  %1216 = vst [vmem:[%s512_s21] sm:$0xff] %v1212_v57 }
 0x415   : > { %v1215_v59 = vmul.f32 %v1959_v58, %v1185_v41 }
 0x416   : > { %v1961_v60 = vpop.eup %1960 }
 0x417   : > { %1219 = vst [vmem:[%s512_s21 + $0x18] sm:$0xff] %v1215_v59  ;;  %v1214_v61 = vmul.f32 %v1961_v60, %v1180_v44 }
 0x419   : > { %1218 = vst [vmem:[%s512_s21 + $0x10] sm:$0xff] %v1214_v61 }
 0x41a   : > { %2215 = shalt.err (!%p2212_p8)
}
 0x41b   : > { %s2216_s27 = scalar_lea.hbm %s2768_s25, 512  ;;  %s2220_s23 = scalar_lea.hbm %s2820_s9, 1024 }
 0x41c   : > { %p2217_p12 = scmp.ne.s32.totalorder %s2768_s25, %s2216_s27  ;;  %p2221_p2 = scmp.lt.s32.totalorder %s2768_s25, %s2820_s9 }
 0x41d   : > { %p2222_p11 = scmp.lt.s32.totalorder %s2220_s23, %s2216_s27 }
 0x41e   : > { %p2218_p9 = pnand %p2217_p12, %p2871_p1 }
 0x41f   : > { %p2223_p4 = por %p2222_p11, %p2221_p2 }
 0x420   : > { %p2219_p0 = pneg %p2218_p9 }
 0x422   : > { %p2224_p13 = pnand %p2223_p4, %p2219_p0 }
 0x424   : > { %2227 = shalt.err (!%p2224_p13)
}
 0x425   : > { %s2296_s16 = smov 128   ;;  %s2297_s7 = smov 8  }
 0x426   : > { %1815 = dma.vmem_to_hbm [thread:$0]  (%p2871_p1), %s2763_s22, 512, %s2768_s25, %s1221_s18, %s2296_s16, %s2296_s16, %s2297_s7  }
 0x427 PF: > { %s2872_s12 = sld [smem:[#allocation27_spill]]  ;;  %s1249_s19 = sand.u32 1, %s2270_s30  }
 0x428   : > { %s2873_s21 = sld [smem:[#allocation24_spill]]  ;;  %s1250_s14 = scalar_lea.sflag [#allocation4], %s1249_s19 }
 0x42d   : > { %p2874_p3 = scmp.ne.s32.totalorder %s2872_s12, 0 }
 0x42e   : > { %p2875_p6 = scmp.ge.s32.totalorder %s2873_s21, 2 }
 0x430   : > { %p1847_p7 = pnand %p2875_p6, %p2874_p3 }
 0x432   : > { %p1848_p5 = pneg %p1847_p7 }
 0x434   : > { %2265 = dma.done.wait (%p1848_p5), %s1250_s14, 512  }
 0x435   : > { %2267 = vsyncadd (%p1848_p5), %s1250_s14, 4294966784  ;;  %s2876_s12 = sld [smem:[#allocation25_spill]]  ;;  %s2878_s30 = smov %s2274_s10 }
 0x436   : > { %s2877_s3 = sld [smem:[#allocation26_spill]]  ;;  %s2879_s10 = smov %s2278_s11 }
 0x43b   : > { %p28_p10 = scmp.ge.s32.totalorder %s2876_s12, 4  }
 0x43c   : > { %s2880_s11 = smov %s2877_s3 }
 0x43d   :  { %30 = sbr.rel (!%p28_p10) target bundleno = 15 (0xf), region = 149 }
 0x442   :  { %1255 = vsyncpa [#allocation3], 1 }
 0x443   :  { %1257 = vsyncpa [#allocation3 + $0x1], 1 }
 0x444   :  { %1258 = vsyncpa [#allocation6], 1 }
 0x445   :  { %1260 = vsyncpa [#allocation6 + $0x1], 1 }
 0x446   :  { %1261 = vsyncpa [#allocation9], 1 }
 0x447   :  { %1262 = vsyncpa [#allocation12], 1 }
 0x448   :  { %1263 = vsyncpa [#allocation15], 1 }
 0x449   :  { %1264 = vsyncpa [#allocation4], 1 }
 0x44a   :  { %1266 = vsyncpa [#allocation4 + $0x1], 1 }

</bundles_post_ra>
